<compile_context>
chip_gen: v7x
topology: tpu7x:2x2x1
jax: 0.10.0
libtpu: 0.0.40
codegen_flags: <defaults>
</compile_context>

<pallas_src>
import functools

import jax
import jax.numpy as jnp
from jax import lax
from jax.experimental import pallas as pl
from jax.experimental.pallas import tpu as pltpu


# ------------------------------ fused Pallas kernel -------------------------


def _encoder_kernel(num_layers, H, W, L, *refs):
    """Fused Encoder forward for ONE batch element (one grid step).

    refs (inputs, then output):
      x_ref      (1, 3, H*W)     original image, channel-major (NCHW flattened)
      wm_ref     (1, L, 1)       watermark bits
      per encoder conv layer l (num_layers of them):
        w_l      (Cc, 9*Cin_l)   im2col-flattened 3x3 weight
        s_l      (Cc, 1)         folded-BN scale
        b_l      (Cc, 1)         folded-BN bias
      w_ac_wm    (Cc, 9*L)       after_concat weight, watermark channel slice
      w_ac_enc   (Cc, 9*Cc)      after_concat weight, encoded channel slice
      w_ac_x     (Cc, 9*3)       after_concat weight, original-image channel slice
      s_ac, b_ac (Cc, 1)
      w_fin      (3, Cc)         final 1x1 conv weight (transposed)
      b_fin      (3, 1)
      o_ref      (1, 3, H*W)     output, channel-major (== flattened NCHW)
    """
    HW = H * W
    f32 = jnp.float32

    x_ref, wm_ref = refs[0], refs[1]
    pos = 2
    layers = []
    for _ in range(num_layers):
        layers.append(refs[pos:pos + 3])
        pos += 3
    w_ac_wm, w_ac_enc, w_ac_x, s_ac, b_ac = refs[pos:pos + 5]
    pos += 5
    w_fin, b_fin = refs[pos], refs[pos + 1]
    o_ref = refs[pos + 2]

    # x-coordinate of every output pixel (lane dim); masks for the dx = +-1 taps.
    # The dy = +-1 boundary is fully covered by the flat (W+1)-wide zero pads below.
    col = lax.broadcasted_iota(jnp.int32, (1, HW), 1) % W
    mask_l = (col >= 1).astype(f32)       # tap dx = -1 valid iff x >= 1
    mask_r = (col <= W - 2).astype(f32)   # tap dx = +1 valid iff x <= W-2

    def im2col(act):
        """(C, H*W) -> (9*C, H*W) patch matrix of a 3x3 'same' (zero-padded) conv."""
        c = act.shape[0]
        zpad = jnp.zeros((c, W + 1), f32)
        padded = jnp.concatenate([zpad, act, zpad], axis=1)    # (C, HW + 2W + 2)
        taps = []
        for dy in (-1, 0, 1):
            for dx in (-1, 0, 1):
                start = (W + 1) + dy * W + dx
                t = lax.slice_in_dim(padded, start, start + HW, axis=1)
                if dx == -1:
                    t = t * mask_l
                elif dx == 1:
                    t = t * mask_r
                taps.append(t)
        return jnp.concatenate(taps, axis=0)                   # (9*C, HW)

    x_cm = x_ref[0].astype(f32)                                # (3, HW)
    wm_cm = jnp.broadcast_to(wm_ref[0].astype(f32), (L, HW))   # (L, HW), spatial-const

    # encoder conv stack (each layer: one im2col matmul + fused BN/ReLU epilogue)
    act = x_cm
    for w_ref, s_ref, b_ref in layers:
        y = jnp.dot(w_ref[...], im2col(act), preferred_element_type=f32)
        act = jnp.maximum(y * s_ref[...] + b_ref[...], 0.0)

    # after_concat 3x3 conv == sum of three weight-split convs (concat eliminated)
    y = (jnp.dot(w_ac_wm[...], im2col(wm_cm), preferred_element_type=f32)
         + jnp.dot(w_ac_enc[...], im2col(act), preferred_element_type=f32)
         + jnp.dot(w_ac_x[...], im2col(x_cm), preferred_element_type=f32))
    act = jnp.maximum(y * s_ac[...] + b_ac[...], 0.0)

    # final 1x1 conv, produced directly in channel-major (NCHW) layout: lane-dense store
    out = jnp.dot(w_fin[...], act, preferred_element_type=f32) + b_fin[...]
    o_ref[0] = out.astype(o_ref.dtype)


# ------------------------------ host-side wrapper ----------------------------


def _flatten_conv_w(w_hwio):
    """(3, 3, Cin, Cout) HWIO -> (Cout, 9*Cin); column = tap*(Cin) + cin, tap = ky*3+kx."""
    kh, kw, cin, cout = w_hwio.shape
    return jnp.transpose(w_hwio, (3, 0, 1, 2)).reshape(cout, kh * kw * cin)


class EncoderConfig:
    H = 16
    W = 16
    encoder_channels = 32
    encoder_blocks = 2
    decoder_blocks = 4          # != 8  -> no tanh / JND branch
    watermark_length = 8


def init_params(key, cfg):
    """Deterministic synthetic parameters (ConvBNRelu = conv + folded BN + relu)."""
    params = {"conv_layers": [], "after_concat": None, "final": None}

    def conv_bn(key, cin, cout):
        k1, k2, k3, k4, k5 = jax.random.split(key, 5)
        w = jax.random.normal(k1, (3, 3, cin, cout), jnp.float32) * 0.1
        gamma = 1.0 + 0.05 * jax.random.normal(k2, (cout,), jnp.float32)
        beta = 0.05 * jax.random.normal(k3, (cout,), jnp.float32)
        mean = 0.05 * jax.random.normal(k4, (cout,), jnp.float32)
        var = jnp.abs(jax.random.normal(k5, (cout,), jnp.float32)) * 0.1 + 1.0
        eps = 1e-5
        scale = gamma / jnp.sqrt(var + eps)
        bias = beta - mean * scale
        return {"w": w, "scale": scale, "bias": bias}

    keys = jax.random.split(key, cfg.encoder_blocks + 2)
    cin = 3
    for i in range(cfg.encoder_blocks):
        params["conv_layers"].append(conv_bn(keys[i], cin, cfg.encoder_channels))
        cin = cfg.encoder_channels

    # channel order of the concat: [watermark(L), encoded(Cc), original(3)]
    concat_c = cfg.watermark_length + cfg.encoder_channels + 3
    params["after_concat"] = conv_bn(keys[-2], concat_c, cfg.encoder_channels)

    kf1, kf2 = jax.random.split(keys[-1])
    params["final"] = {
        "w": jax.random.normal(kf1, (cfg.encoder_channels, 3), jnp.float32) * 0.1,
        "b": 0.05 * jax.random.normal(kf2, (3,), jnp.float32),
    }
    return params


@functools.partial(jax.jit, static_argnums=(3,))
def encoder_forward(original_image_nchw, watermark, params, cfg):
    """original_image_nchw: (B, 3, H, W); watermark: (B, L). Returns (B, 3, H, W)."""
    B = original_image_nchw.shape[0]
    H, W, L = cfg.H, cfg.W, cfg.watermark_length
    Cc = cfg.encoder_channels
    HW = H * W

    # NCHW -> channel-major flat: a pure reshape (no transpose, no data movement).
    x_cm = original_image_nchw.reshape(B, 3, HW)

    wm = 2.0 * watermark - 1.0 if cfg.decoder_blocks == 8 else watermark
    wm = wm.reshape(B, L, 1)

    inputs = [x_cm, wm]
    in_specs = [
        pl.BlockSpec((1, 3, HW), lambda i: (i, 0, 0)),
        pl.BlockSpec((1, L, 1), lambda i: (i, 0, 0)),
    ]

    def add_weight(arr):
        inputs.append(arr)
        in_specs.append(pl.BlockSpec(arr.shape, lambda i: (0, 0)))

    for layer in params["conv_layers"]:
        add_weight(_flatten_conv_w(layer["w"]))
        add_weight(layer["scale"].reshape(Cc, 1))
        add_weight(layer["bias"].reshape(Cc, 1))

    ac = params["after_concat"]
    w_ac = ac["w"]                                          # (3, 3, L + Cc + 3, Cc)
    add_weight(_flatten_conv_w(w_ac[:, :, :L, :]))          # watermark channel slice
    add_weight(_flatten_conv_w(w_ac[:, :, L:L + Cc, :]))    # encoded channel slice
    add_weight(_flatten_conv_w(w_ac[:, :, L + Cc:, :]))     # original-image slice
    add_weight(ac["scale"].reshape(Cc, 1))
    add_weight(ac["bias"].reshape(Cc, 1))

    add_weight(params["final"]["w"].T)                      # (3, Cc)
    add_weight(params["final"]["b"].reshape(3, 1))

    out_cm = pl.pallas_call(
        functools.partial(_encoder_kernel, cfg.encoder_blocks, H, W, L),
        out_shape=jax.ShapeDtypeStruct((B, 3, HW), original_image_nchw.dtype),
        grid_spec=pltpu.PrefetchScalarGridSpec(
            num_scalar_prefetch=0,
            grid=(B,),
            in_specs=in_specs,
            out_specs=pl.BlockSpec((1, 3, HW), lambda i: (i, 0, 0)),
        ),
        compiler_params=pltpu.CompilerParams(
            dimension_semantics=("parallel",)),
    )(*inputs)

    # TODO(synk): decoder_blocks == 8 path (tanh, JND heatmaps, residual blend) omitted.

    # channel-major flat == NCHW flat: only a reshape needed (no output transpose).
    return out_cm.reshape(B, 3, H, W)


# ------------------------------ pure-JAX reference ---------------------------


def _ref_conv3x3_bn_relu(x, w, scale, bias):
    y = lax.conv_general_dilated(
        x, w, window_strides=(1, 1), padding="SAME",
        dimension_numbers=("NHWC", "HWIO", "NHWC"))
    return jnp.maximum(y * scale + bias, 0.0)


def _ref_forward(x_nchw, watermark, params, cfg):
    b = x_nchw.shape[0]
    x = jnp.transpose(x_nchw, (0, 2, 3, 1))
    wm = watermark if cfg.decoder_blocks != 8 else 2.0 * watermark - 1.0
    ew = jnp.broadcast_to(wm[:, None, None, :],
                          (b, cfg.H, cfg.W, cfg.watermark_length))
    enc = x
    for layer in params["conv_layers"]:
        enc = _ref_conv3x3_bn_relu(enc, layer["w"], layer["scale"],
                                   layer["bias"])
    concat = jnp.concatenate([ew, enc, x], axis=-1)
    ac = params["after_concat"]
    y = _ref_conv3x3_bn_relu(concat, ac["w"], ac["scale"], ac["bias"])
    y = lax.conv_general_dilated(
        y, params["final"]["w"][None, None], (1, 1), "SAME",
        dimension_numbers=("NHWC", "HWIO", "NHWC")) + params["final"]["b"]
    return jnp.transpose(y, (0, 3, 1, 2))


# ------------------------------------ main -----------------------------------


if __name__ == "__main__":
    cfg = EncoderConfig()
    key = jax.random.PRNGKey(0)
    kx, kw, kp = jax.random.split(key, 3)

    B = 2
    original_image = jax.random.normal(kx, (B, 3, cfg.H, cfg.W), jnp.float32)
    watermark = (jax.random.uniform(kw, (B, cfg.watermark_length)) > 0.5
                 ).astype(jnp.float32)

    params = init_params(kp, cfg)

    out = encoder_forward(original_image, watermark, params, cfg)
    out = jax.block_until_ready(out)
    assert out.shape == (B, 3, cfg.H, cfg.W), out.shape

    ref = jax.block_until_ready(_ref_forward(original_image, watermark, params, cfg))
    assert jnp.allclose(out, ref, atol=1e-4, rtol=1e-4), \
        float(jnp.max(jnp.abs(out - ref)))

    print("KERNEL_OK")
</pallas_src>

<mosaic_0001>
module attributes {stable_mosaic.version = 11 : i64} {
  func.func @_encoder_kernel(%arg0: i32, %arg1: memref<1x3x256xf32, #tpu.memory_space<vmem>>, %arg2: memref<1x8x1xf32, #tpu.memory_space<vmem>>, %arg3: memref<32x27xf32, #tpu.memory_space<vmem>>, %arg4: memref<32x1xf32, #tpu.memory_space<vmem>>, %arg5: memref<32x1xf32, #tpu.memory_space<vmem>>, %arg6: memref<32x288xf32, #tpu.memory_space<vmem>>, %arg7: memref<32x1xf32, #tpu.memory_space<vmem>>, %arg8: memref<32x1xf32, #tpu.memory_space<vmem>>, %arg9: memref<32x72xf32, #tpu.memory_space<vmem>>, %arg10: memref<32x288xf32, #tpu.memory_space<vmem>>, %arg11: memref<32x27xf32, #tpu.memory_space<vmem>>, %arg12: memref<32x1xf32, #tpu.memory_space<vmem>>, %arg13: memref<32x1xf32, #tpu.memory_space<vmem>>, %arg14: memref<3x32xf32, #tpu.memory_space<vmem>>, %arg15: memref<3x1xf32, #tpu.memory_space<vmem>>, %arg16: memref<1x3x256xf32, #tpu.memory_space<vmem>>) attributes {dimension_semantics = [#tpu.dimension_semantics<parallel>], iteration_bounds = array<i64: 2>, scalar_prefetch = 0 : i64, scratch_operands = 0 : i64, tpu.core_type = #tpu.core_type<tc>, window_params = [{transform_indices = @transform_0, window_bounds = array<i64: 1, 3, 256>}, {transform_indices = @transform_1, window_bounds = array<i64: 1, 8, 1>}, {pipeline_mode = #tpu.pipeline_mode<synchronous>, transform_indices = @transform_2, window_bounds = array<i64: 32, 27>}, {pipeline_mode = #tpu.pipeline_mode<synchronous>, transform_indices = @transform_3, window_bounds = array<i64: 32, 1>}, {pipeline_mode = #tpu.pipeline_mode<synchronous>, transform_indices = @transform_4, window_bounds = array<i64: 32, 1>}, {pipeline_mode = #tpu.pipeline_mode<synchronous>, transform_indices = @transform_5, window_bounds = array<i64: 32, 288>}, {pipeline_mode = #tpu.pipeline_mode<synchronous>, transform_indices = @transform_6, window_bounds = array<i64: 32, 1>}, {pipeline_mode = #tpu.pipeline_mode<synchronous>, transform_indices = @transform_7, window_bounds = array<i64: 32, 1>}, {pipeline_mode = #tpu.pipeline_mode<synchronous>, transform_indices = @transform_8, window_bounds = array<i64: 32, 72>}, {pipeline_mode = #tpu.pipeline_mode<synchronous>, transform_indices = @transform_9, window_bounds = array<i64: 32, 288>}, {pipeline_mode = #tpu.pipeline_mode<synchronous>, transform_indices = @transform_10, window_bounds = array<i64: 32, 27>}, {pipeline_mode = #tpu.pipeline_mode<synchronous>, transform_indices = @transform_11, window_bounds = array<i64: 32, 1>}, {pipeline_mode = #tpu.pipeline_mode<synchronous>, transform_indices = @transform_12, window_bounds = array<i64: 32, 1>}, {pipeline_mode = #tpu.pipeline_mode<synchronous>, transform_indices = @transform_13, window_bounds = array<i64: 3, 32>}, {pipeline_mode = #tpu.pipeline_mode<synchronous>, transform_indices = @transform_14, window_bounds = array<i64: 3, 1>}, {transform_indices = @transform_15, window_bounds = array<i64: 1, 3, 256>}]} {
    %0 = tpu.iota {dimensions = array<i32: 1>} : vector<1x256xi32>
    %c16_i32 = arith.constant 16 : i32
    %c0_i32 = arith.constant 0 : i32
    %1 = arith.cmpi eq, %c16_i32, %c0_i32 : i32
    %c1_i32 = arith.constant 1 : i32
    %2 = arith.select %1, %c1_i32, %c16_i32 : i32
    %3 = vector.broadcast %2 : i32 to vector<1x256xi32>
    %4 = arith.remsi %0, %3 : vector<1x256xi32>
    %c0_i32_0 = arith.constant 0 : i32
    %5 = vector.broadcast %c0_i32_0 : i32 to vector<1x256xi32>
    %6 = arith.cmpi ne, %4, %5 : vector<1x256xi32>
    %c0_i32_1 = arith.constant 0 : i32
    %7 = vector.broadcast %c0_i32_1 : i32 to vector<1x256xi32>
    %8 = arith.cmpi slt, %4, %7 : vector<1x256xi32>
    %c0_i32_2 = arith.constant 0 : i32
    %9 = arith.cmpi slt, %2, %c0_i32_2 : i32
    %10 = vector.broadcast %9 : i1 to vector<1x256xi1>
    %11 = vector.broadcast %10 : vector<1x256xi1> to vector<1x256xi1>
    %12 = arith.xori %8, %11 : vector<1x256xi1>
    %13 = arith.andi %12, %6 : vector<1x256xi1>
    %14 = vector.broadcast %2 : i32 to vector<1x256xi32>
    %15 = arith.addi %4, %14 : vector<1x256xi32>
    %16 = arith.select %13, %15, %4 : vector<1x256xi1>, vector<1x256xi32>
    %c1_i32_3 = arith.constant 1 : i32
    %17 = vector.broadcast %c1_i32_3 : i32 to vector<1x256xi32>
    %18 = arith.cmpi sge, %16, %17 : vector<1x256xi32>
    %19 = arith.extui %18 : vector<1x256xi1> to vector<1x256xi32>
    %20 = arith.sitofp %19 : vector<1x256xi32> to vector<1x256xf32>
    %c14_i32 = arith.constant 14 : i32
    %21 = vector.broadcast %c14_i32 : i32 to vector<1x256xi32>
    %22 = arith.cmpi sle, %16, %21 : vector<1x256xi32>
    %23 = arith.extui %22 : vector<1x256xi1> to vector<1x256xi32>
    %24 = arith.sitofp %23 : vector<1x256xi32> to vector<1x256xf32>
    %c0 = arith.constant 0 : index
    %c0_4 = arith.constant 0 : index
    %c0_5 = arith.constant 0 : index
    %25 = vector.load %arg1[%c0, %c0_4, %c0_5] : memref<1x3x256xf32, #tpu.memory_space<vmem>>, vector<1x3x256xf32>
    %26 = vector.shape_cast %25 : vector<1x3x256xf32> to vector<3x256xf32>
    %c0_6 = arith.constant 0 : index
    %c0_7 = arith.constant 0 : index
    %c0_8 = arith.constant 0 : index
    %27 = vector.load %arg2[%c0_6, %c0_7, %c0_8] : memref<1x8x1xf32, #tpu.memory_space<vmem>>, vector<1x8x1xf32>
    %28 = vector.shape_cast %27 : vector<1x8x1xf32> to vector<8x1xf32>
    %29 = vector.shape_cast %28 : vector<8x1xf32> to vector<8x1xf32>
    %30 = vector.broadcast %29 : vector<8x1xf32> to vector<8x256xf32>
    %c0_9 = arith.constant 0 : index
    %c0_10 = arith.constant 0 : index
    %31 = vector.load %arg3[%c0_9, %c0_10] : memref<32x27xf32, #tpu.memory_space<vmem>>, vector<32x27xf32>
    %cst = arith.constant 0.000000e+00 : f32
    %32 = vector.broadcast %cst : f32 to vector<3x17xf32>
    %33 = tpu.concatenate %32, %26, %32 in 1 : vector<3x17xf32>, vector<3x256xf32>, vector<3x17xf32> -> vector<3x290xf32>
    %34 = vector.extract_strided_slice %33 {offsets = [0, 0], sizes = [3, 256], strides = [1, 1]} : vector<3x290xf32> to vector<3x256xf32>
    %35 = vector.broadcast %20 : vector<1x256xf32> to vector<3x256xf32>
    %36 = arith.mulf %34, %35 : vector<3x256xf32>
    %37 = vector.extract_strided_slice %33 {offsets = [0, 1], sizes = [3, 256], strides = [1, 1]} : vector<3x290xf32> to vector<3x256xf32>
    %38 = vector.extract_strided_slice %33 {offsets = [0, 2], sizes = [3, 256], strides = [1, 1]} : vector<3x290xf32> to vector<3x256xf32>
    %39 = vector.broadcast %24 : vector<1x256xf32> to vector<3x256xf32>
    %40 = arith.mulf %38, %39 : vector<3x256xf32>
    %41 = vector.extract_strided_slice %33 {offsets = [0, 16], sizes = [3, 256], strides = [1, 1]} : vector<3x290xf32> to vector<3x256xf32>
    %42 = vector.broadcast %20 : vector<1x256xf32> to vector<3x256xf32>
    %43 = arith.mulf %41, %42 : vector<3x256xf32>
    %44 = vector.extract_strided_slice %33 {offsets = [0, 17], sizes = [3, 256], strides = [1, 1]} : vector<3x290xf32> to vector<3x256xf32>
    %45 = vector.extract_strided_slice %33 {offsets = [0, 18], sizes = [3, 256], strides = [1, 1]} : vector<3x290xf32> to vector<3x256xf32>
    %46 = vector.broadcast %24 : vector<1x256xf32> to vector<3x256xf32>
    %47 = arith.mulf %45, %46 : vector<3x256xf32>
    %48 = vector.extract_strided_slice %33 {offsets = [0, 32], sizes = [3, 256], strides = [1, 1]} : vector<3x290xf32> to vector<3x256xf32>
    %49 = vector.broadcast %20 : vector<1x256xf32> to vector<3x256xf32>
    %50 = arith.mulf %48, %49 : vector<3x256xf32>
    %51 = vector.extract_strided_slice %33 {offsets = [0, 33], sizes = [3, 256], strides = [1, 1]} : vector<3x290xf32> to vector<3x256xf32>
    %52 = vector.extract_strided_slice %33 {offsets = [0, 34], sizes = [3, 256], strides = [1, 1]} : vector<3x290xf32> to vector<3x256xf32>
    %53 = vector.broadcast %24 : vector<1x256xf32> to vector<3x256xf32>
    %54 = arith.mulf %52, %53 : vector<3x256xf32>
    %55 = tpu.concatenate %36, %37, %40, %43, %44, %47, %50, %51, %54 in 0 : vector<3x256xf32>, vector<3x256xf32>, vector<3x256xf32>, vector<3x256xf32>, vector<3x256xf32>, vector<3x256xf32>, vector<3x256xf32>, vector<3x256xf32>, vector<3x256xf32> -> vector<27x256xf32>
    %cst_11 = arith.constant dense<0.000000e+00> : vector<32x256xf32>
    %56 = tpu.matmul %31, %55, %cst_11 {dimension_numbers = #tpu.dot_dimension_numbers<[1], [0], [0], [1], [0, 0, 1, 1], [], []>} : vector<32x27xf32>, vector<27x256xf32>, vector<32x256xf32> -> vector<32x256xf32>
    %c0_12 = arith.constant 0 : index
    %c0_13 = arith.constant 0 : index
    %57 = vector.load %arg4[%c0_12, %c0_13] : memref<32x1xf32, #tpu.memory_space<vmem>>, vector<32x1xf32>
    %58 = vector.broadcast %57 : vector<32x1xf32> to vector<32x256xf32>
    %59 = arith.mulf %56, %58 : vector<32x256xf32>
    %c0_14 = arith.constant 0 : index
    %c0_15 = arith.constant 0 : index
    %60 = vector.load %arg5[%c0_14, %c0_15] : memref<32x1xf32, #tpu.memory_space<vmem>>, vector<32x1xf32>
    %61 = vector.broadcast %60 : vector<32x1xf32> to vector<32x256xf32>
    %62 = arith.addf %59, %61 : vector<32x256xf32>
    %cst_16 = arith.constant 0.000000e+00 : f32
    %63 = vector.broadcast %cst_16 : f32 to vector<32x256xf32>
    %64 = arith.maximumf %62, %63 : vector<32x256xf32>
    %c0_17 = arith.constant 0 : index
    %c0_18 = arith.constant 0 : index
    %65 = vector.load %arg6[%c0_17, %c0_18] : memref<32x288xf32, #tpu.memory_space<vmem>>, vector<32x288xf32>
    %cst_19 = arith.constant 0.000000e+00 : f32
    %66 = vector.broadcast %cst_19 : f32 to vector<32x17xf32>
    %67 = tpu.concatenate %66, %64, %66 in 1 : vector<32x17xf32>, vector<32x256xf32>, vector<32x17xf32> -> vector<32x290xf32>
    %68 = vector.extract_strided_slice %67 {offsets = [0, 0], sizes = [32, 256], strides = [1, 1]} : vector<32x290xf32> to vector<32x256xf32>
    %69 = vector.broadcast %20 : vector<1x256xf32> to vector<32x256xf32>
    %70 = arith.mulf %68, %69 : vector<32x256xf32>
    %71 = vector.extract_strided_slice %67 {offsets = [0, 1], sizes = [32, 256], strides = [1, 1]} : vector<32x290xf32> to vector<32x256xf32>
    %72 = vector.extract_strided_slice %67 {offsets = [0, 2], sizes = [32, 256], strides = [1, 1]} : vector<32x290xf32> to vector<32x256xf32>
    %73 = vector.broadcast %24 : vector<1x256xf32> to vector<32x256xf32>
    %74 = arith.mulf %72, %73 : vector<32x256xf32>
    %75 = vector.extract_strided_slice %67 {offsets = [0, 16], sizes = [32, 256], strides = [1, 1]} : vector<32x290xf32> to vector<32x256xf32>
    %76 = vector.broadcast %20 : vector<1x256xf32> to vector<32x256xf32>
    %77 = arith.mulf %75, %76 : vector<32x256xf32>
    %78 = vector.extract_strided_slice %67 {offsets = [0, 17], sizes = [32, 256], strides = [1, 1]} : vector<32x290xf32> to vector<32x256xf32>
    %79 = vector.extract_strided_slice %67 {offsets = [0, 18], sizes = [32, 256], strides = [1, 1]} : vector<32x290xf32> to vector<32x256xf32>
    %80 = vector.broadcast %24 : vector<1x256xf32> to vector<32x256xf32>
    %81 = arith.mulf %79, %80 : vector<32x256xf32>
    %82 = vector.extract_strided_slice %67 {offsets = [0, 32], sizes = [32, 256], strides = [1, 1]} : vector<32x290xf32> to vector<32x256xf32>
    %83 = vector.broadcast %20 : vector<1x256xf32> to vector<32x256xf32>
    %84 = arith.mulf %82, %83 : vector<32x256xf32>
    %85 = vector.extract_strided_slice %67 {offsets = [0, 33], sizes = [32, 256], strides = [1, 1]} : vector<32x290xf32> to vector<32x256xf32>
    %86 = vector.extract_strided_slice %67 {offsets = [0, 34], sizes = [32, 256], strides = [1, 1]} : vector<32x290xf32> to vector<32x256xf32>
    %87 = vector.broadcast %24 : vector<1x256xf32> to vector<32x256xf32>
    %88 = arith.mulf %86, %87 : vector<32x256xf32>
    %89 = tpu.concatenate %70, %71, %74, %77, %78, %81, %84, %85, %88 in 0 : vector<32x256xf32>, vector<32x256xf32>, vector<32x256xf32>, vector<32x256xf32>, vector<32x256xf32>, vector<32x256xf32>, vector<32x256xf32>, vector<32x256xf32>, vector<32x256xf32> -> vector<288x256xf32>
    %cst_20 = arith.constant dense<0.000000e+00> : vector<32x256xf32>
    %90 = tpu.matmul %65, %89, %cst_20 {dimension_numbers = #tpu.dot_dimension_numbers<[1], [0], [0], [1], [0, 0, 1, 1], [], []>} : vector<32x288xf32>, vector<288x256xf32>, vector<32x256xf32> -> vector<32x256xf32>
    %c0_21 = arith.constant 0 : index
    %c0_22 = arith.constant 0 : index
    %91 = vector.load %arg7[%c0_21, %c0_22] : memref<32x1xf32, #tpu.memory_space<vmem>>, vector<32x1xf32>
    %92 = vector.broadcast %91 : vector<32x1xf32> to vector<32x256xf32>
    %93 = arith.mulf %90, %92 : vector<32x256xf32>
    %c0_23 = arith.constant 0 : index
    %c0_24 = arith.constant 0 : index
    %94 = vector.load %arg8[%c0_23, %c0_24] : memref<32x1xf32, #tpu.memory_space<vmem>>, vector<32x1xf32>
    %95 = vector.broadcast %94 : vector<32x1xf32> to vector<32x256xf32>
    %96 = arith.addf %93, %95 : vector<32x256xf32>
    %cst_25 = arith.constant 0.000000e+00 : f32
    %97 = vector.broadcast %cst_25 : f32 to vector<32x256xf32>
    %98 = arith.maximumf %96, %97 : vector<32x256xf32>
    %c0_26 = arith.constant 0 : index
    %c0_27 = arith.constant 0 : index
    %99 = vector.load %arg9[%c0_26, %c0_27] : memref<32x72xf32, #tpu.memory_space<vmem>>, vector<32x72xf32>
    %cst_28 = arith.constant 0.000000e+00 : f32
    %100 = vector.broadcast %cst_28 : f32 to vector<8x17xf32>
    %101 = tpu.concatenate %100, %30, %100 in 1 : vector<8x17xf32>, vector<8x256xf32>, vector<8x17xf32> -> vector<8x290xf32>
    %102 = vector.extract_strided_slice %101 {offsets = [0, 0], sizes = [8, 256], strides = [1, 1]} : vector<8x290xf32> to vector<8x256xf32>
    %103 = vector.broadcast %20 : vector<1x256xf32> to vector<8x256xf32>
    %104 = arith.mulf %102, %103 : vector<8x256xf32>
    %105 = vector.extract_strided_slice %101 {offsets = [0, 1], sizes = [8, 256], strides = [1, 1]} : vector<8x290xf32> to vector<8x256xf32>
    %106 = vector.extract_strided_slice %101 {offsets = [0, 2], sizes = [8, 256], strides = [1, 1]} : vector<8x290xf32> to vector<8x256xf32>
    %107 = vector.broadcast %24 : vector<1x256xf32> to vector<8x256xf32>
    %108 = arith.mulf %106, %107 : vector<8x256xf32>
    %109 = vector.extract_strided_slice %101 {offsets = [0, 16], sizes = [8, 256], strides = [1, 1]} : vector<8x290xf32> to vector<8x256xf32>
    %110 = vector.broadcast %20 : vector<1x256xf32> to vector<8x256xf32>
    %111 = arith.mulf %109, %110 : vector<8x256xf32>
    %112 = vector.extract_strided_slice %101 {offsets = [0, 17], sizes = [8, 256], strides = [1, 1]} : vector<8x290xf32> to vector<8x256xf32>
    %113 = vector.extract_strided_slice %101 {offsets = [0, 18], sizes = [8, 256], strides = [1, 1]} : vector<8x290xf32> to vector<8x256xf32>
    %114 = vector.broadcast %24 : vector<1x256xf32> to vector<8x256xf32>
    %115 = arith.mulf %113, %114 : vector<8x256xf32>
    %116 = vector.extract_strided_slice %101 {offsets = [0, 32], sizes = [8, 256], strides = [1, 1]} : vector<8x290xf32> to vector<8x256xf32>
    %117 = vector.broadcast %20 : vector<1x256xf32> to vector<8x256xf32>
    %118 = arith.mulf %116, %117 : vector<8x256xf32>
    %119 = vector.extract_strided_slice %101 {offsets = [0, 33], sizes = [8, 256], strides = [1, 1]} : vector<8x290xf32> to vector<8x256xf32>
    %120 = vector.extract_strided_slice %101 {offsets = [0, 34], sizes = [8, 256], strides = [1, 1]} : vector<8x290xf32> to vector<8x256xf32>
    %121 = vector.broadcast %24 : vector<1x256xf32> to vector<8x256xf32>
    %122 = arith.mulf %120, %121 : vector<8x256xf32>
    %123 = tpu.concatenate %104, %105, %108, %111, %112, %115, %118, %119, %122 in 0 : vector<8x256xf32>, vector<8x256xf32>, vector<8x256xf32>, vector<8x256xf32>, vector<8x256xf32>, vector<8x256xf32>, vector<8x256xf32>, vector<8x256xf32>, vector<8x256xf32> -> vector<72x256xf32>
    %cst_29 = arith.constant dense<0.000000e+00> : vector<32x256xf32>
    %124 = tpu.matmul %99, %123, %cst_29 {dimension_numbers = #tpu.dot_dimension_numbers<[1], [0], [0], [1], [0, 0, 1, 1], [], []>} : vector<32x72xf32>, vector<72x256xf32>, vector<32x256xf32> -> vector<32x256xf32>
    %c0_30 = arith.constant 0 : index
    %c0_31 = arith.constant 0 : index
    %125 = vector.load %arg10[%c0_30, %c0_31] : memref<32x288xf32, #tpu.memory_space<vmem>>, vector<32x288xf32>
    %cst_32 = arith.constant 0.000000e+00 : f32
    %126 = vector.broadcast %cst_32 : f32 to vector<32x17xf32>
    %127 = tpu.concatenate %126, %98, %126 in 1 : vector<32x17xf32>, vector<32x256xf32>, vector<32x17xf32> -> vector<32x290xf32>
    %128 = vector.extract_strided_slice %127 {offsets = [0, 0], sizes = [32, 256], strides = [1, 1]} : vector<32x290xf32> to vector<32x256xf32>
    %129 = vector.broadcast %20 : vector<1x256xf32> to vector<32x256xf32>
    %130 = arith.mulf %128, %129 : vector<32x256xf32>
    %131 = vector.extract_strided_slice %127 {offsets = [0, 1], sizes = [32, 256], strides = [1, 1]} : vector<32x290xf32> to vector<32x256xf32>
    %132 = vector.extract_strided_slice %127 {offsets = [0, 2], sizes = [32, 256], strides = [1, 1]} : vector<32x290xf32> to vector<32x256xf32>
    %133 = vector.broadcast %24 : vector<1x256xf32> to vector<32x256xf32>
    %134 = arith.mulf %132, %133 : vector<32x256xf32>
    %135 = vector.extract_strided_slice %127 {offsets = [0, 16], sizes = [32, 256], strides = [1, 1]} : vector<32x290xf32> to vector<32x256xf32>
    %136 = vector.broadcast %20 : vector<1x256xf32> to vector<32x256xf32>
    %137 = arith.mulf %135, %136 : vector<32x256xf32>
    %138 = vector.extract_strided_slice %127 {offsets = [0, 17], sizes = [32, 256], strides = [1, 1]} : vector<32x290xf32> to vector<32x256xf32>
    %139 = vector.extract_strided_slice %127 {offsets = [0, 18], sizes = [32, 256], strides = [1, 1]} : vector<32x290xf32> to vector<32x256xf32>
    %140 = vector.broadcast %24 : vector<1x256xf32> to vector<32x256xf32>
    %141 = arith.mulf %139, %140 : vector<32x256xf32>
    %142 = vector.extract_strided_slice %127 {offsets = [0, 32], sizes = [32, 256], strides = [1, 1]} : vector<32x290xf32> to vector<32x256xf32>
    %143 = vector.broadcast %20 : vector<1x256xf32> to vector<32x256xf32>
    %144 = arith.mulf %142, %143 : vector<32x256xf32>
    %145 = vector.extract_strided_slice %127 {offsets = [0, 33], sizes = [32, 256], strides = [1, 1]} : vector<32x290xf32> to vector<32x256xf32>
    %146 = vector.extract_strided_slice %127 {offsets = [0, 34], sizes = [32, 256], strides = [1, 1]} : vector<32x290xf32> to vector<32x256xf32>
    %147 = vector.broadcast %24 : vector<1x256xf32> to vector<32x256xf32>
    %148 = arith.mulf %146, %147 : vector<32x256xf32>
    %149 = tpu.concatenate %130, %131, %134, %137, %138, %141, %144, %145, %148 in 0 : vector<32x256xf32>, vector<32x256xf32>, vector<32x256xf32>, vector<32x256xf32>, vector<32x256xf32>, vector<32x256xf32>, vector<32x256xf32>, vector<32x256xf32>, vector<32x256xf32> -> vector<288x256xf32>
    %cst_33 = arith.constant dense<0.000000e+00> : vector<32x256xf32>
    %150 = tpu.matmul %125, %149, %cst_33 {dimension_numbers = #tpu.dot_dimension_numbers<[1], [0], [0], [1], [0, 0, 1, 1], [], []>} : vector<32x288xf32>, vector<288x256xf32>, vector<32x256xf32> -> vector<32x256xf32>
    %151 = arith.addf %124, %150 : vector<32x256xf32>
    %c0_34 = arith.constant 0 : index
    %c0_35 = arith.constant 0 : index
    %152 = vector.load %arg11[%c0_34, %c0_35] : memref<32x27xf32, #tpu.memory_space<vmem>>, vector<32x27xf32>
    %cst_36 = arith.constant 0.000000e+00 : f32
    %153 = vector.broadcast %cst_36 : f32 to vector<3x17xf32>
    %154 = tpu.concatenate %153, %26, %153 in 1 : vector<3x17xf32>, vector<3x256xf32>, vector<3x17xf32> -> vector<3x290xf32>
    %155 = vector.extract_strided_slice %154 {offsets = [0, 0], sizes = [3, 256], strides = [1, 1]} : vector<3x290xf32> to vector<3x256xf32>
    %156 = vector.broadcast %20 : vector<1x256xf32> to vector<3x256xf32>
    %157 = arith.mulf %155, %156 : vector<3x256xf32>
    %158 = vector.extract_strided_slice %154 {offsets = [0, 1], sizes = [3, 256], strides = [1, 1]} : vector<3x290xf32> to vector<3x256xf32>
    %159 = vector.extract_strided_slice %154 {offsets = [0, 2], sizes = [3, 256], strides = [1, 1]} : vector<3x290xf32> to vector<3x256xf32>
    %160 = vector.broadcast %24 : vector<1x256xf32> to vector<3x256xf32>
    %161 = arith.mulf %159, %160 : vector<3x256xf32>
    %162 = vector.extract_strided_slice %154 {offsets = [0, 16], sizes = [3, 256], strides = [1, 1]} : vector<3x290xf32> to vector<3x256xf32>
    %163 = vector.broadcast %20 : vector<1x256xf32> to vector<3x256xf32>
    %164 = arith.mulf %162, %163 : vector<3x256xf32>
    %165 = vector.extract_strided_slice %154 {offsets = [0, 17], sizes = [3, 256], strides = [1, 1]} : vector<3x290xf32> to vector<3x256xf32>
    %166 = vector.extract_strided_slice %154 {offsets = [0, 18], sizes = [3, 256], strides = [1, 1]} : vector<3x290xf32> to vector<3x256xf32>
    %167 = vector.broadcast %24 : vector<1x256xf32> to vector<3x256xf32>
    %168 = arith.mulf %166, %167 : vector<3x256xf32>
    %169 = vector.extract_strided_slice %154 {offsets = [0, 32], sizes = [3, 256], strides = [1, 1]} : vector<3x290xf32> to vector<3x256xf32>
    %170 = vector.broadcast %20 : vector<1x256xf32> to vector<3x256xf32>
    %171 = arith.mulf %169, %170 : vector<3x256xf32>
    %172 = vector.extract_strided_slice %154 {offsets = [0, 33], sizes = [3, 256], strides = [1, 1]} : vector<3x290xf32> to vector<3x256xf32>
    %173 = vector.extract_strided_slice %154 {offsets = [0, 34], sizes = [3, 256], strides = [1, 1]} : vector<3x290xf32> to vector<3x256xf32>
    %174 = vector.broadcast %24 : vector<1x256xf32> to vector<3x256xf32>
    %175 = arith.mulf %173, %174 : vector<3x256xf32>
    %176 = tpu.concatenate %157, %158, %161, %164, %165, %168, %171, %172, %175 in 0 : vector<3x256xf32>, vector<3x256xf32>, vector<3x256xf32>, vector<3x256xf32>, vector<3x256xf32>, vector<3x256xf32>, vector<3x256xf32>, vector<3x256xf32>, vector<3x256xf32> -> vector<27x256xf32>
    %cst_37 = arith.constant dense<0.000000e+00> : vector<32x256xf32>
    %177 = tpu.matmul %152, %176, %cst_37 {dimension_numbers = #tpu.dot_dimension_numbers<[1], [0], [0], [1], [0, 0, 1, 1], [], []>} : vector<32x27xf32>, vector<27x256xf32>, vector<32x256xf32> -> vector<32x256xf32>
    %178 = arith.addf %151, %177 : vector<32x256xf32>
    %c0_38 = arith.constant 0 : index
    %c0_39 = arith.constant 0 : index
    %179 = vector.load %arg12[%c0_38, %c0_39] : memref<32x1xf32, #tpu.memory_space<vmem>>, vector<32x1xf32>
    %180 = vector.broadcast %179 : vector<32x1xf32> to vector<32x256xf32>
    %181 = arith.mulf %178, %180 : vector<32x256xf32>
    %c0_40 = arith.constant 0 : index
    %c0_41 = arith.constant 0 : index
    %182 = vector.load %arg13[%c0_40, %c0_41] : memref<32x1xf32, #tpu.memory_space<vmem>>, vector<32x1xf32>
    %183 = vector.broadcast %182 : vector<32x1xf32> to vector<32x256xf32>
    %184 = arith.addf %181, %183 : vector<32x256xf32>
    %cst_42 = arith.constant 0.000000e+00 : f32
    %185 = vector.broadcast %cst_42 : f32 to vector<32x256xf32>
    %186 = arith.maximumf %184, %185 : vector<32x256xf32>
    %c0_43 = arith.constant 0 : index
    %c0_44 = arith.constant 0 : index
    %187 = vector.load %arg14[%c0_43, %c0_44] : memref<3x32xf32, #tpu.memory_space<vmem>>, vector<3x32xf32>
    %cst_45 = arith.constant dense<0.000000e+00> : vector<3x256xf32>
    %188 = tpu.matmul %187, %186, %cst_45 {dimension_numbers = #tpu.dot_dimension_numbers<[1], [0], [0], [1], [0, 0, 1, 1], [], []>} : vector<3x32xf32>, vector<32x256xf32>, vector<3x256xf32> -> vector<3x256xf32>
    %c0_46 = arith.constant 0 : index
    %c0_47 = arith.constant 0 : index
    %189 = vector.load %arg15[%c0_46, %c0_47] : memref<3x1xf32, #tpu.memory_space<vmem>>, vector<3x1xf32>
    %190 = vector.broadcast %189 : vector<3x1xf32> to vector<3x256xf32>
    %191 = arith.addf %188, %190 : vector<3x256xf32>
    %c0_48 = arith.constant 0 : index
    %c0_49 = arith.constant 0 : index
    %c0_50 = arith.constant 0 : index
    %192 = vector.load %arg16[%c0_48, %c0_49, %c0_50] : memref<1x3x256xf32, #tpu.memory_space<vmem>>, vector<1x3x256xf32>
    %193 = vector.shape_cast %192 : vector<1x3x256xf32> to vector<3x256xf32>
    %194 = vector.shape_cast %191 : vector<3x256xf32> to vector<1x3x256xf32>
    tpu.vector_store %arg16[%c0_48, %c0_49, %c0_50], %194 {strides = array<i32>} : memref<1x3x256xf32, #tpu.memory_space<vmem>>, vector<1x3x256xf32>,
    return
  }
  func.func @transform_0(%arg0: i32) -> (i32, i32, i32) {
    %c0_i32 = arith.constant 0 : i32
    %c0_i32_0 = arith.constant 0 : i32
    %c0_i32_1 = arith.constant 0 : i32
    return %arg0, %c0_i32, %c0_i32_0 : i32, i32, i32
  }
  func.func @transform_1(%arg0: i32) -> (i32, i32, i32) {
    %c0_i32 = arith.constant 0 : i32
    %c0_i32_0 = arith.constant 0 : i32
    %c0_i32_1 = arith.constant 0 : i32
    return %arg0, %c0_i32, %c0_i32_0 : i32, i32, i32
  }
  func.func @transform_2(%arg0: i32) -> (i32, i32) {
    %c0_i32 = arith.constant 0 : i32
    %c0_i32_0 = arith.constant 0 : i32
    %c0_i32_1 = arith.constant 0 : i32
    return %c0_i32, %c0_i32_0 : i32, i32
  }
  func.func @transform_3(%arg0: i32) -> (i32, i32) {
    %c0_i32 = arith.constant 0 : i32
    %c0_i32_0 = arith.constant 0 : i32
    %c0_i32_1 = arith.constant 0 : i32
    return %c0_i32, %c0_i32_0 : i32, i32
  }
  func.func @transform_4(%arg0: i32) -> (i32, i32) {
    %c0_i32 = arith.constant 0 : i32
    %c0_i32_0 = arith.constant 0 : i32
    %c0_i32_1 = arith.constant 0 : i32
    return %c0_i32, %c0_i32_0 : i32, i32
  }
  func.func @transform_5(%arg0: i32) -> (i32, i32) {
    %c0_i32 = arith.constant 0 : i32
    %c0_i32_0 = arith.constant 0 : i32
    %c0_i32_1 = arith.constant 0 : i32
    return %c0_i32, %c0_i32_0 : i32, i32
  }
  func.func @transform_6(%arg0: i32) -> (i32, i32) {
    %c0_i32 = arith.constant 0 : i32
    %c0_i32_0 = arith.constant 0 : i32
    %c0_i32_1 = arith.constant 0 : i32
    return %c0_i32, %c0_i32_0 : i32, i32
  }
  func.func @transform_7(%arg0: i32) -> (i32, i32) {
    %c0_i32 = arith.constant 0 : i32
    %c0_i32_0 = arith.constant 0 : i32
    %c0_i32_1 = arith.constant 0 : i32
    return %c0_i32, %c0_i32_0 : i32, i32
  }
  func.func @transform_8(%arg0: i32) -> (i32, i32) {
    %c0_i32 = arith.constant 0 : i32
    %c0_i32_0 = arith.constant 0 : i32
    %c0_i32_1 = arith.constant 0 : i32
    return %c0_i32, %c0_i32_0 : i32, i32
  }
  func.func @transform_9(%arg0: i32) -> (i32, i32) {
    %c0_i32 = arith.constant 0 : i32
    %c0_i32_0 = arith.constant 0 : i32
    %c0_i32_1 = arith.constant 0 : i32
    return %c0_i32, %c0_i32_0 : i32, i32
  }
  func.func @transform_10(%arg0: i32) -> (i32, i32) {
    %c0_i32 = arith.constant 0 : i32
    %c0_i32_0 = arith.constant 0 : i32
    %c0_i32_1 = arith.constant 0 : i32
    return %c0_i32, %c0_i32_0 : i32, i32
  }
  func.func @transform_11(%arg0: i32) -> (i32, i32) {
    %c0_i32 = arith.constant 0 : i32
    %c0_i32_0 = arith.constant 0 : i32
    %c0_i32_1 = arith.constant 0 : i32
    return %c0_i32, %c0_i32_0 : i32, i32
  }
  func.func @transform_12(%arg0: i32) -> (i32, i32) {
    %c0_i32 = arith.constant 0 : i32
    %c0_i32_0 = arith.constant 0 : i32
    %c0_i32_1 = arith.constant 0 : i32
    return %c0_i32, %c0_i32_0 : i32, i32
  }
  func.func @transform_13(%arg0: i32) -> (i32, i32) {
    %c0_i32 = arith.constant 0 : i32
    %c0_i32_0 = arith.constant 0 : i32
    %c0_i32_1 = arith.constant 0 : i32
    return %c0_i32, %c0_i32_0 : i32, i32
  }
  func.func @transform_14(%arg0: i32) -> (i32, i32) {
    %c0_i32 = arith.constant 0 : i32
    %c0_i32_0 = arith.constant 0 : i32
    %c0_i32_1 = arith.constant 0 : i32
    return %c0_i32, %c0_i32_0 : i32, i32
  }
  func.func @transform_15(%arg0: i32) -> (i32, i32, i32) {
    %c0_i32 = arith.constant 0 : i32
    %c0_i32_0 = arith.constant 0 : i32
    %c0_i32_1 = arith.constant 0 : i32
    return %arg0, %c0_i32, %c0_i32_0 : i32, i32, i32
  }
}

</mosaic_0001>

<bundles_post_ra>
// kernel: encoder_forward.1
= control target key start
LH: loop header
LB: loop body
LE: loop exit
PB: predicated region body
PF: predicated region fallthrough
CT: control target
= control target key end

     0   :  { %s3984_s18 = smov 0   ;;  %s5416_s0 = inlined_call_operand.vmem [shape: f32[2,3,256], index: 0, kind: input, shape index: {}]   ;;  %s5417_s1 = inlined_call_operand.vmem [shape: f32[2,8,1], index: 1, kind: input, shape index: {}]   ;;  %s5418_s2 = inlined_call_operand.vmem [shape: f32[32,27], index: 2, kind: input, shape index: {}]   ;;  %s5419_s3 = inlined_call_operand.vmem [shape: f32[32,1], index: 3, kind: input, shape index: {}]   ;;  %s5420_s4 = inlined_call_operand.vmem [shape: f32[32,1], index: 4, kind: input, shape index: {}]   ;;  %s5421_s5 = inlined_call_operand.vmem [shape: f32[32,288], index: 5, kind: input, shape index: {}]   ;;  %s5422_s6 = inlined_call_operand.vmem [shape: f32[32,1], index: 6, kind: input, shape index: {}]   ;;  %s5423_s7 = inlined_call_operand.vmem [shape: f32[32,1], index: 7, kind: input, shape index: {}]   ;;  %s5424_s8 = inlined_call_operand.vmem [shape: f32[32,72], index: 8, kind: input, shape index: {}]   ;;  %s5425_s9 = inlined_call_operand.vmem [shape: f32[32,288], index: 9, kind: input, shape index: {}]   ;;  %s5426_s10 = inlined_call_operand.vmem [shape: f32[32,27], index: 10, kind: input, shape index: {}]   ;;  %s5427_s11 = inlined_call_operand.vmem [shape: f32[32,1], index: 11, kind: input, shape index: {}]   ;;  %s5428_s12 = inlined_call_operand.vmem [shape: f32[32,1], index: 12, kind: input, shape index: {}]   ;;  %s5429_s13 = inlined_call_operand.vmem [shape: f32[3,32], index: 13, kind: input, shape index: {}]   ;;  %s5430_s14 = inlined_call_operand.vmem [shape: f32[3,1], index: 14, kind: input, shape index: {}]   ;;  %s5431_s15 = inlined_call_operand.vmem [shape: f32[2,3,256], index: 15, kind: output, shape index: {}]  }
   0x1   :  { %5453 = sst [smem:[#allocation2_spill]] %s5416_s0 }
   0x2   :  { %5454 = sst [smem:[#allocation3_spill]] %s5418_s2 }
   0x3   :  { %5455 = sst [smem:[#allocation4_spill]] %s5419_s3 }
   0x4 LB: > { %s3008_s19 = sadd.s32 4294967295, %s3885_s18   ;;  %p3012_p0 = scmp.ge.s32.totalorder %s3885_s18, 1  ;;  %s3885_s18 = sphi %s3984_s18, %s25_s18  }
   0x5   : > { %p446_p1 = scmp.lt.s32.totalorder %s3885_s18, 3 }
   0x7   : > { %p447_p2 = pnand %p3012_p0, %p446_p1 }
   0x8   : > { %p498_p3 = scmp.lt.s32.totalorder (!%p447_p2), %s3008_s19, 1  ;;  %v512_v0 = vlaneseq (!%p447_p2)  ;;  %v5445_v1 = vmov (!%p447_p2), 0.0   ;;  %s5456_s0 = sld [smem:[#allocation2_spill]] (!%p447_p2)  ;;  %vm568_vm4 = vcmask (!%p447_p2), 138240   ;;  %vm583_vm5 = vcmask (!%p447_p2), 15360  }
   0x9   : > { %450 = sbr.rel (%p447_p2) target bundleno = 1897 (0x769), region = 80  ;;  %867 = vmatprep.mubr.f32.mxu0 (!%p447_p2), %v5445_v1  ;;  %s5451_s24 = smov (!%p447_p2), 17   ;;  %vm597_vm6 = vcmask (!%p447_p2), 130048   ;;  %vm609_vm7 = vcmask (!%p447_p2), 146432   ;;  %vm5444_vm8 = vcmask (!%p447_p2), 261120   ;;  %vm633_vm9 = vcmask (!%p447_p2), 277504  }
   0xa   : > { %v513_v2 = vand.u32 (!%p447_p2), 127, %v512_v0  ;;  %s3889_s25 = smov (!%p447_p2), 2   ;;  %s3890_s26 = smov (!%p447_p2), 18   ;;  %vm686_vm10 = vcmask (!%p447_p2), 916480   ;;  %vm734_vm11 = vcmask (!%p447_p2), 785408   ;;  %vm652_vm12 = vcmask (!%p447_p2), 1039360  }
   0xb   : > { %s3891_s27 = smov (!%p447_p2), 16   ;;  %s3892_s28 = smov (!%p447_p2), 34   ;;  %vm700_vm13 = vcmask (!%p447_p2), 908288   ;;  %vm669_vm14 = vcmask (!%p447_p2), 1031168   ;;  %vm765_vm15 = vcmask (!%p447_p2), 1042432  }
   0xc   : > { %v514_v3 = vadd.s32 (!%p447_p2), 128, %v513_v2  ;;  %v519_v4 = vand.u32 (!%p447_p2), 15, %v513_v2  ;;  %s3893_s29 = smov (!%p447_p2), 32   ;;  %s5449_s30 = smov (!%p447_p2), 127  }
   0xd   : > { %s5447_s16 = smov (!%p447_p2), 111   ;;  %s5442_s17 = smov (!%p447_p2), 126  }
   0xe   : > { %v526_v6 = vand.u32 (!%p447_p2), 15, %v514_v3  ;;  %vm539_vm0 = vcmp.ge.s32.totalorder (!%p447_p2), %v519_v4, 1  ;;  %vm545_vm1 = vcmp.le.s32.totalorder (!%p447_p2), %v519_v4, 14  ;;  %s5432_s21 = smov (!%p447_p2), 95   ;;  %s5436_s22 = smov (!%p447_p2), 110  }
   0xf   : > { %v3020_v8 = vsel (!%p447_p2), %vm545_vm1, 1.0, %v5445_v1  ;;  %v4002_v9 = vsel (!%p447_p2), %vm539_vm0, 1.0, %v5445_v1  ;;  %s5457_s3 = sld [smem:[#allocation4_spill]] (!%p447_p2)  ;;  %vm717_vm0 = vcmask (!%p447_p2), 900096   ;;  %vm768_vm1 = vcmask (!%p447_p2), 1045504   ;;  %s5460_s2 = sld [smem:[#allocation3_spill]] (!%p447_p2) }
  0x10   : > { %s5486_s19 = smov (!%p498_p3, %s3008_s19), 1  ;;  %vm546_vm2 = vcmp.le.s32.totalorder %v526_v6, 14  ;;  %vm540_vm3 = vcmp.ge.s32.totalorder %v526_v6, 1 }
  0x11   : > { %s3993_s20 = sshll.u32 %s5486_s19, 3  ;;  %v3021_v10 = vsel %vm546_vm2, 1.0, %v5445_v1  ;;  %v4006_v11 = vsel %vm540_vm3, 1.0, %v5445_v1  ;;  %s5438_s19 = smov 112   ;;  %vm748_vm2 = vcmask 777216   ;;  %vm771_vm3 = vcmask 1040384  }
  0x12   : > { %s502_s23 = scalar_lea.vmem %s5456_s0, %s3993_s20  ;;  %v3296_v12 = vpack.i.bf16 %v3021_v10, %v3020_v8  ;;  %v3301_v13 = vpack.i.bf16 %v4006_v11, %v4002_v9 }
  0x13   : > { %v551_v5 = vld [vmem:[%s502_s23] sm:$0x77]  ;;  %s5434_s23 = smov 96  }
  0x14   : > { %564 = vrot.lane.b32.xlu0 %v551_v5, %s5451_s24  ;;  %v563_v7 = vcombine.high %v551_v5, %v551_v5  ;;  %3297 = vrot.lane.b32.xlu1 %v3296_v12, %s3889_s25  ;;  %s5440_s25 = smov 94  }
  0x18   : > { %566 = vrot.lane.b32.xlu0 %v563_v7, %s5451_s24  ;;  %3302 = vrot.lane.b32.xlu1 %v3301_v13, %s3891_s27  ;;  %s5466_s27 = smov 94  }
  0x1c   : > { %3307 = vrot.lane.b32.xlu0 %v3296_v12, %s3890_s26  ;;  %3312 = vrot.lane.b32.xlu1 %v3301_v13, %s3893_s29  ;;  %s506_s29 = scalar_lea.vmem %s5417_s1, %s3993_s20  ;;  %s5479_s26 = smov 111  }
  0x20   : > { %3317 = vrot.lane.b32.xlu0 %v3296_v12, %s3892_s28 }
  0x86   : > { %v565_v14 = vpop.permute.xlu0 %564  ;;  %v3298_v21 = vpop.permute.xlu1 %3297 }
  0x87   : > { %v4012_v15 = vsel %vm568_vm4, 0.0, %v565_v14  ;;  %v4024_v22 = vunpack.i.h.bf16 %v3298_v21  ;;  %v4026_v23 = vunpack.i.l.bf16 %v3298_v21 }
  0x88   : > { %v643_v16 = vrot.slane %v4012_v15, 5  ;;  %v691_v17 = vrot.slane %v4012_v15, 4 }
  0x89   : > { %v588_v28 = vmul.f32 %v4026_v23, %v4012_v15  ;;  %v4036_v32 = vsel %vm583_vm5, %v4026_v23, %v4024_v22  ;;  %vm774_vm5 = vcmask 1043456  }
  0x8a   : > { %v567_v18 = vpop.permute.xlu0 %566  ;;  %646 = vrot.lane.b32.xlu1 %v643_v16, %s5449_s30  ;;  %694 = vrot.lane.b32.xlu0 %v691_v17, %s5447_s16  ;;  %v3303_v29 = vpop.permute.xlu1 %3302  ;;  %v739_v17 = vrot.slane %v4012_v15, 3 }
  0x8b   : > { %v4019_v19 = vsel %vm568_vm4, %v565_v14, %v567_v18  ;;  %v4022_v20 = vsel %vm568_vm4, %v567_v18, 0.0  ;;  %v4040_v34 = vunpack.i.h.bf16 %v3303_v29  ;;  %v4042_v35 = vunpack.i.l.bf16 %v3303_v29  ;;  %v924_v29 = vld [vmem:[%s5420_s4] sm:$0xff] }
  0x8c   : > { %v644_v24 = vrot.slane %v4019_v19, 5  ;;  %v645_v25 = vrot.slane %v4022_v20, 5  ;;  %v692_v30 = vrot.slane %v4019_v19, 4  ;;  %v693_v31 = vrot.slane %v4022_v20, 4 }
  0x8d   : > { %v660_v36 = vrot.slane %v588_v28, 2  ;;  %v602_v38 = vmul.f32 %v4042_v35, %v4012_v15  ;;  %v590_v39 = vmul.f32 %v4024_v22, %v4022_v20  ;;  %v740_v42 = vrot.slane %v4019_v19, 3 }
  0x8e   : > { %v3308_v26 = vpop.permute.xlu0 %3307  ;;  %v3321_v27 = vpack.i.bf16 %v645_v25, %v644_v24  ;;  %v3313_v40 = vpop.permute.xlu1 %3312  ;;  %v3326_v41 = vpack.i.bf16 %v693_v31, %v692_v30  ;;  %v741_v43 = vrot.slane %v4022_v20, 3  ;;  %v589_v44 = vmul.f32 %v4036_v32, %v4019_v19  ;;  %v894_v30 = vld [vmem:[%s5457_s3 + $0x10] sm:$0xff]  ;;  %v925_v31 = vld [vmem:[%s5420_s4 + $0x8] sm:$0xff] }
  0x8f   : > { %v4038_v33 = vunpack.i.l.bf16 %v3308_v26  ;;  %v4045_v37 = vunpack.i.h.bf16 %v3308_v26  ;;  %663 = vrot.lane.b32.xlu0 %v660_v36, %s5442_s17  ;;  %v4056_v45 = vunpack.i.l.bf16 %v3313_v40  ;;  %v677_v46 = vrot.slane %v602_v38, 7  ;;  %v926_v36 = vld [vmem:[%s5420_s4 + $0x10] sm:$0xff]  ;;  %v895_v38 = vld [vmem:[%s5457_s3 + $0x18] sm:$0xff] }
  0x90   : > { %3322 = vrot.lane.b32.xlu1 %v3321_v27, %s5449_s30  ;;  %v4062_v48 = vsel %vm597_vm6, %v4042_v35, %v4040_v34  ;;  %v4064_v49 = vunpack.i.h.bf16 %v3313_v40  ;;  %v662_v51 = vrot.slane %v590_v39, 2  ;;  %v661_v52 = vrot.slane %v589_v44, 2  ;;  %v892_v27 = vld [vmem:[%s5457_s3] sm:$0xff]  ;;  %v927_v39 = vld [vmem:[%s5420_s4 + $0x18] sm:$0xff] }
  0x91   : > { %v614_v47 = vmul.f32 %v4038_v33, %v4012_v15  ;;  %v4068_v50 = vsel %vm609_vm7, %v4038_v33, %v4045_v37  ;;  %v603_v53 = vmul.f32 %v4062_v48, %v4019_v19  ;;  %v604_v54 = vmul.f32 %v4040_v34, %v4022_v20 }
  0x92   : > { %v616_v55 = vmul.f32 %v4045_v37, %v4022_v20  ;;  %v3331_v56 = vpack.i.bf16 %v741_v43, %v740_v42  ;;  %v626_v58 = vmul.f32 %v4056_v45, %v4012_v15  ;;  %v615_v59 = vmul.f32 %v4068_v50, %v4019_v19  ;;  %v3318_v61 = vpop.permute.xlu0 %3317 }
  0x93   : > { %3327 = vrot.lane.b32.xlu0 %v3326_v41, %s5447_s16  ;;  %v708_v57 = vrot.slane %v614_v47, 1  ;;  %v4085_v60 = vsel %vm5444_vm8, %v4056_v45, %v4064_v49  ;;  %v3336_v62 = vpack.i.bf16 %v662_v51, %v661_v52  ;;  %v678_v63 = vrot.slane %v603_v53, 7 }
  0x94   : > { %680 = vrot.lane.b32.xlu1 %v677_v46, %s5438_s19  ;;  %v679_v0 = vrot.slane %v604_v54, 7  ;;  %v710_v2 = vrot.slane %v616_v55, 1  ;;  %v725_v3 = vrot.slane %v626_v58, 6  ;;  %v709_v4 = vrot.slane %v615_v59, 1 }
  0x95   : > { %v627_v5 = vmul.f32 %v4085_v60, %v4019_v19  ;;  %v628_v6 = vmul.f32 %v4064_v49, %v4022_v20  ;;  %v4093_v7 = vunpack.i.h.bf16 %v3318_v61  ;;  %v4095_v8 = vunpack.i.l.bf16 %v3318_v61 }
  0x96   : > { %v3341_v10 = vpack.i.bf16 %v679_v0, %v678_v63  ;;  %v3346_v12 = vpack.i.bf16 %v710_v2, %v709_v4  ;;  %v3902_v28 = vmov 0   ;;  %v575_v54 = vmul.f32 %v4002_v9, %v4012_v15 }
  0x97   : > { %711 = vrot.lane.b32.xlu0 %v708_v57, %s5436_s22  ;;  %v726_v13 = vrot.slane %v627_v5, 6  ;;  %v727_v14 = vrot.slane %v628_v6, 6  ;;  %v4101_v16 = vsel %vm633_vm9, %v4095_v8, %v4093_v7  ;;  %v640_v24 = vmul.f32 %v4093_v7, %v4022_v20  ;;  %3361 = vset.pattern.permute.xlu1 %v3902_v28  ;;  %v893_v20 = vld [vmem:[%s5457_s3 + $0x8] sm:$0xff]  ;;  %s5477_s3 = smov 17  }
  0x98   : > { %3332 = vrot.lane.b32.xlu1 %v3331_v56, %s5432_s21  ;;  %v639_v21 = vmul.f32 %v4101_v16, %v4019_v19  ;;  %v638_v25 = vmul.f32 %v4095_v8, %v4012_v15  ;;  %3362 = vset.pattern.permute.xlu0 %v3902_v28  ;;  %v576_v57 = vmul.f32 %v4006_v11, %v4019_v19  ;;  %vm762_vm6 = vcmask 769024  }
  0x99   : > { %v3351_v18 = vpack.i.bf16 %v727_v14, %v726_v13  ;;  %vm777_vm7 = vcmask 1046528   ;;  %vm780_vm9 = vcmask 1041408   ;;  %vm783_vm8 = vcmask 1044480  }
  0x9a   : > { %v3356_v26 = vpack.i.bf16 %v640_v24, %v639_v21 }
  0x9b   : > { %728 = vrot.lane.b32.xlu0 %v725_v3, %s5434_s23 }
  0x9c   : > { %3337 = vrot.lane.b32.xlu1 %v3336_v62, %s5442_s17  ;;  %s5463_s17 = smov 110  }
  0x9f   : > { %3342 = vrot.lane.b32.xlu0 %v3341_v10, %s5438_s19  ;;  %s5462_s19 = smov 112  }
  0xa0   : > { %3347 = vrot.lane.b32.xlu1 %v3346_v12, %s5436_s22  ;;  %s5464_s22 = smov 96  }
  0xa3   : > { %742 = vrot.lane.b32.xlu0 %v739_v17, %s5432_s21  ;;  %s5461_s21 = smov 126  }
  0xa4   : > { %3352 = vrot.lane.b32.xlu1 %v3351_v18, %s5434_s23  ;;  %s5465_s23 = smov 95  }
  0xa7   : > { %756 = vrot.lane.b32.xlu0 %v638_v25, %s5440_s25 }
  0xa8   : > { %3357 = vrot.lane.b32.xlu1 %v3356_v26, %s5440_s25  ;;  %s5478_s25 = smov 127  }
  0xab   : > { %903 = vperm.xlu0 %3362, %v893_v20  }
  0xac   : > { %898 = vperm.xlu1 %3361, %v892_v27  }
  0xaf   : > { %908 = vperm.xlu0 %3362, %v894_v30  }
  0xb0   : > { %930 = vperm.xlu1 %3361, %v924_v29  }
  0xb3   : > { %940 = vperm.xlu0 %3362, %v926_v36  }
  0xb4   : > { %935 = vperm.xlu1 %3361, %v925_v31  }
  0xb8   : > { %913 = vperm.xlu1 %3361, %v895_v38  }
  0xbc   : > { %945 = vperm.xlu1 %3361, %v927_v39  }
  0xfc   : > { %v647_v40 = vpop.permute.xlu1 %646  ;;  %v695_v41 = vpop.permute.xlu0 %694 }
 0x101   : > { %v664_v43 = vpop.permute.xlu0 %663 }
 0x102   : > { %v3323_v42 = vpop.permute.xlu1 %3322 }
 0x103   : > { %v3325_v52 = vunpack.i.h.bf16 %v3323_v42  ;;  %v3324_v53 = vunpack.i.l.bf16 %v3323_v42 }
 0x105   : > { %v3328_v46 = vpop.permute.xlu0 %3327  ;;  %v654_v63 = vsel %vm652_vm12, %v3324_v53, %v3325_v52  ;;  %v653_v15 = vsel %vm652_vm12, %v647_v40, %v3324_v53 }
 0x106   : > { %v681_v44 = vpop.permute.xlu1 %680  ;;  %v3330_v61 = vunpack.i.h.bf16 %v3328_v46  ;;  %v3329_v62 = vunpack.i.l.bf16 %v3328_v46  ;;  %v767_v12 = vsel %vm765_vm15, %v576_v57, %v654_v63  ;;  %v766_v14 = vsel %vm765_vm15, %v575_v54, %v653_v15  ;;  %v1873_v15 = vld [vmem:[%s5425_s9 + $0x58] sm:$0xff] }
 0x108   : > { %v702_v10 = vsel %vm700_vm13, %v3329_v62, %v3330_v61  ;;  %v701_v13 = vsel %vm700_vm13, %v695_v41, %v3329_v62 }
 0x109   : > { %v712_v51 = vpop.permute.xlu0 %711 }
 0x10a   : > { %v4140_v47 = vpop.permute.xlu1 %3332 }
 0x10b   : > { %v3335_v17 = vunpack.i.h.bf16 %v4140_v47  ;;  %v3334_v25 = vunpack.i.l.bf16 %v4140_v47 }
 0x10d   : > { %v729_v56 = vpop.permute.xlu0 %728 }
 0x10e   : > { %v3338_v55 = vpop.permute.xlu1 %3337 }
 0x10f   : > { %v3340_v58 = vunpack.i.h.bf16 %v3338_v55  ;;  %v3339_v59 = vunpack.i.l.bf16 %v3338_v55 }
 0x111   : > { %v3343_v0 = vpop.permute.xlu0 %3342  ;;  %v671_v19 = vsel %vm669_vm14, %v3339_v59, %v3340_v58  ;;  %v670_v24 = vsel %vm669_vm14, %v664_v43, %v3339_v59  ;;  %v750_v58 = vsel %vm748_vm2, %v3334_v25, %v3335_v17 }
 0x112   : > { %v3348_v2 = vpop.permute.xlu1 %3347  ;;  %v3345_v3 = vunpack.i.h.bf16 %v3343_v0  ;;  %v3344_v4 = vunpack.i.l.bf16 %v3343_v0  ;;  %v770_v28 = vsel %vm768_vm1, %v767_v12, %v671_v19  ;;  %v769_v41 = vsel %vm768_vm1, %v766_v14, %v670_v24 }
 0x113   : > { %v3350_v5 = vunpack.i.h.bf16 %v3348_v2  ;;  %v3349_v6 = vunpack.i.l.bf16 %v3348_v2  ;;  %vm3903_vm1 = vmmov 1  }
 0x114   : > { %v687_v18 = vsel %vm686_vm10, %v681_v44, %v3344_v4  ;;  %v688_v21 = vsel %vm686_vm10, %v3344_v4, %v3345_v3  ;;  %v558_v3 = vld [vmem:[%s5460_s2] sm:$0xff]  ;;  %v559_v4 = vld [vmem:[%s5460_s2 + $0x8] sm:$0xff] }
 0x115   : > { %v743_v26 = vpop.permute.xlu0 %742  ;;  %v773_v20 = vsel %vm771_vm3, %v671_v19, %v688_v21  ;;  %v772_v29 = vsel %vm771_vm3, %v670_v24, %v687_v18  ;;  %v719_v36 = vsel %vm717_vm0, %v3349_v6, %v3350_v5  ;;  %v718_v40 = vsel %vm717_vm0, %v712_v51, %v3349_v6  ;;  %vm4184_vm3 = vmpackc.low %vm765_vm15, %vm3903_vm1  ;;  %v560_v5 = vld [vmem:[%s5460_s2 + $0x10] sm:$0xff]  ;;  %v561_v6 = vld [vmem:[%s5460_s2 + $0x18] sm:$0xff] }
 0x116   : > { %v3353_v27 = vpop.permute.xlu1 %3352  ;;  %v776_v38 = vsel %vm774_vm5, %v773_v20, %v702_v10  ;;  %v775_v42 = vsel %vm774_vm5, %v772_v29, %v701_v13  ;;  %vm786_vm15 = vcmask 220160  }
 0x117   : > { %v3355_v30 = vunpack.i.h.bf16 %v3353_v27  ;;  %v3354_v31 = vunpack.i.l.bf16 %v3353_v27  ;;  %v779_v39 = vsel %vm777_vm7, %v776_v38, %v719_v36  ;;  %v778_v47 = vsel %vm777_vm7, %v775_v42, %v718_v40 }
 0x118   : > { %v4169_v46 = vpack.c.bf16 %v779_v39, %v770_v28  ;;  %v4174_v55 = vpack.c.bf16 %v778_v47, %v769_v41 }
 0x119   : > { %v735_v43 = vsel %vm734_vm11, %v729_v56, %v3354_v31  ;;  %v736_v44 = vsel %vm734_vm11, %v3354_v31, %v3355_v30  ;;  %v749_v56 = vsel %vm748_vm2, %v743_v26, %v3334_v25  ;;  %v757_v59 = vpop.permute.xlu0 %756 }
 0x11a   : > { %v3358_v52 = vpop.permute.xlu1 %3357  ;;  %v782_v53 = vsel %vm780_vm9, %v719_v36, %v736_v44  ;;  %v781_v54 = vsel %vm780_vm9, %v718_v40, %v735_v43  ;;  %3052 = vmatprep.subr.bf16.mxu0 %v4169_v46 }
 0x11b   : > { %v3360_v51 = vunpack.i.h.bf16 %v3358_v52  ;;  %v3359_v57 = vunpack.i.l.bf16 %v3358_v52  ;;  %3054 = vmatpush1.bf16.msra.mxu0 %v4174_v55  ;;  %v785_v63 = vsel %vm783_vm8, %v782_v53, %v750_v58  ;;  %v784_v0 = vsel %vm783_vm8, %v781_v54, %v749_v56 }
 0x11c   : > { %vm5473_vm8 = vcmask 261120  }
 0x11d   : > { %v763_v61 = vsel %vm762_vm6, %v757_v59, %v3359_v57  ;;  %v764_v62 = vsel %vm762_vm6, %v3359_v57, %v3360_v51  ;;  %vm5474_vm5 = vmmov %vm5473_vm8 }
 0x11e   : > { %v4189_v2 = vpack.c.bf16 %v764_v62, %v785_v63  ;;  %v4191_v19 = vpack.c.bf16 %v763_v61, %v784_v0  ;;  %vm5475_vm7 = vmmov %vm5474_vm5 }
 0x11f   : > { %vm5476_vm9 = vmmov %vm5474_vm5 }
 0x120   : > { %3057 = vmatprep.subr.msk.bf16.mxu0 %vm4184_vm3, %v4189_v2 }
 0x121   : > { %3060 = vmatpush1.bf16.msk.msra.mxu0 %vm4184_vm3, %v4191_v19 }
 0x124   : > { %3024 = vmatmul.mubr.msk.f32.vlgmr.msra.gmra.mrb[0].mxu0 %vm786_vm15, %v558_v3 }
 0x125   : > { %873 = vmatprep.mubr.f32.mxu0 %v5445_v1 }
 0x128   : > { %3025 = vmatmul.mubr.msk.f32.gmra.mrb[2].mxu0 %vm786_vm15, %v559_v4 }
 0x129   : > { %879 = vmatprep.mubr.f32.mxu0 %v5445_v1 }
 0x12a   : > { %v904_v13 = vpop.permute.xlu0 %903 }
 0x12b   : > { %v899_v10 = vpop.permute.xlu1 %898 }
 0x12c   : > { %3026 = vmatmul.mubr.msk.f32.gmra.mrb[4].mxu0 %vm786_vm15, %v560_v5 }
 0x12d   : > { %885 = vmatprep.mubr.f32.mxu0 %v5445_v1 }
 0x12e   : > { %v909_v26 = vpop.permute.xlu0 %908 }
 0x12f   : > { %v931_v12 = vpop.permute.xlu1 %930 }
 0x130   : > { %3027 = vmatmul.mubr.msk.f32.gmra.mrb[6].mxu0 %vm786_vm15, %v561_v6 }
 0x132   : > { %v941_v47 = vpop.permute.xlu0 %940 }
 0x133   : > { %v936_v21 = vpop.permute.xlu1 %935 }
 0x137   : > { %v914_v39 = vpop.permute.xlu1 %913 }
 0x13b   : > { %v946_v61 = vpop.permute.xlu1 %945 }
 0x1f7   : > { %v869_v14 = vpop.f32.mrb[0].mxu0 }
 0x1f8   : > { %v916_v17 = vmul.f32 %v899_v10, %v869_v14  ;;  %v871_v18 = vpop.f32.mrb[1].mxu0 }
 0x1f9   : > { %v917_v24 = vmul.f32 %v899_v10, %v871_v18 }
 0x1fa   : > { %v948_v25 = vadd.f32 %v931_v12, %v916_v17 }
 0x1fb   : > { %v949_v27 = vadd.f32 %v931_v12, %v917_v24  ;;  %v875_v28 = vpop.f32.mrb[2].mxu0 }
 0x1fc   : > { %v956_v20 = vmax.f32 %v948_v25, 0.0  ;;  %v918_v29 = vmul.f32 %v904_v13, %v875_v28  ;;  %v877_v30 = vpop.f32.mrb[3].mxu0 }
 0x1fd   : > { %v957_v31 = vmax.f32 %v949_v27, 0.0  ;;  %v919_v36 = vmul.f32 %v904_v13, %v877_v30 }
 0x1fe   : > { %v950_v38 = vadd.f32 %v936_v21, %v918_v29  ;;  %984 = vrot.lane.b32.xlu0 %v956_v20, %s5451_s24 }
 0x1ff   : > { %v951_v40 = vadd.f32 %v936_v21, %v919_v36  ;;  %986 = vrot.lane.b32.xlu1 %v957_v31, %s5451_s24  ;;  %v881_v41 = vpop.f32.mrb[4].mxu0 }
 0x200   : > { %v958_v42 = vmax.f32 %v950_v38, 0.0  ;;  %v920_v43 = vmul.f32 %v909_v26, %v881_v41  ;;  %v883_v44 = vpop.f32.mrb[5].mxu0 }
 0x201   : > { %v959_v52 = vmax.f32 %v951_v40, 0.0  ;;  %v921_v53 = vmul.f32 %v909_v26, %v883_v44 }
 0x202   : > { %v952_v54 = vadd.f32 %v941_v47, %v920_v43  ;;  %988 = vrot.lane.b32.xlu0 %v958_v42, %s5451_s24 }
 0x203   : > { %v953_v51 = vadd.f32 %v941_v47, %v921_v53  ;;  %990 = vrot.lane.b32.xlu1 %v959_v52, %s5451_s24  ;;  %v887_v57 = vpop.f32.mrb[6].mxu0 }
 0x204   : > { %v960_v58 = vmax.f32 %v952_v54, 0.0  ;;  %v922_v56 = vmul.f32 %v914_v39, %v887_v57  ;;  %v889_v59 = vpop.f32.mrb[7].mxu0 }
 0x205   : > { %v961_v62 = vmax.f32 %v953_v51, 0.0  ;;  %v923_v63 = vmul.f32 %v914_v39, %v889_v59 }
 0x206   : > { %v954_v0 = vadd.f32 %v946_v61, %v922_v56  ;;  %992 = vrot.lane.b32.xlu0 %v960_v58, %s5451_s24 }
 0x207   : > { %v955_v3 = vadd.f32 %v946_v61, %v923_v63  ;;  %994 = vrot.lane.b32.xlu1 %v961_v62, %s5451_s24 }
 0x208   : > { %v962_v4 = vmax.f32 %v954_v0, 0.0 }
 0x209   : > { %v963_v5 = vmax.f32 %v955_v3, 0.0 }
 0x20a   : > { %996 = vrot.lane.b32.xlu0 %v962_v4, %s5451_s24 }
 0x20b   : > { %998 = vrot.lane.b32.xlu1 %v963_v5, %s5451_s24 }
 0x270   : > { %v985_v6 = vpop.permute.xlu0 %984 }
 0x271   : > { %v987_v10 = vpop.permute.xlu1 %986  ;;  %v4237_v18 = vsel %vm568_vm4, 0.0, %v985_v6 }
 0x272   : > { %v4227_v12 = vsel %vm568_vm4, %v985_v6, %v987_v10  ;;  %v4230_v13 = vsel %vm568_vm4, %v987_v10, 0.0  ;;  %v1024_v38 = vmul.f32 %v4002_v9, %v4237_v18 }
 0x273   : > { %v4234_v14 = vpack.i.bf16 %v4230_v13, %v4227_v12  ;;  %v1025_v27 = vmul.f32 %v4006_v11, %v4227_v12  ;;  %v1033_v30 = vmul.f32 %v4227_v12, %v4036_v32  ;;  %v1034_v31 = vmul.f32 %v4024_v22, %v4230_v13 }
 0x274   : > { %v989_v17 = vpop.permute.xlu0 %988  ;;  %v1045_v42 = vmul.f32 %v4227_v12, %v4062_v48  ;;  %v1046_v43 = vmul.f32 %v4040_v34, %v4230_v13 }
 0x275   : > { %v4240_v21 = vsel %vm568_vm4, 0.0, %v989_v17  ;;  %v991_v24 = vpop.permute.xlu1 %990  ;;  %3364 = vrot.lane.b32.xlu0 %v4234_v14, %s5449_s30  ;;  %v3373_v44 = vpack.i.bf16 %v1034_v31, %v1033_v30  ;;  %v1032_v30 = vmul.f32 %v4026_v23, %v4237_v18 }
 0x276   : > { %v4245_v25 = vsel %vm568_vm4, %v989_v17, %v991_v24  ;;  %v4248_v26 = vsel %vm568_vm4, %v991_v24, 0.0  ;;  %v1026_v28 = vmul.f32 %v4002_v9, %v4240_v21  ;;  %v3378_v59 = vpack.i.bf16 %v1046_v43, %v1045_v42 }
 0x277   : > { %v4256_v20 = vpack.i.bf16 %v4248_v26, %v4245_v25  ;;  %v1027_v29 = vmul.f32 %v4006_v11, %v4245_v25  ;;  %v1036_v47 = vmul.f32 %v4245_v25, %v4036_v32  ;;  %v1037_v52 = vmul.f32 %v4024_v22, %v4248_v26 }
 0x278   : > { %v993_v36 = vpop.permute.xlu0 %992  ;;  %v3063_v41 = vpack.c.bf16 %v1026_v28, %v1024_v38  ;;  %v1048_v62 = vmul.f32 %v4245_v25, %v4062_v48  ;;  %v1049_v4 = vmul.f32 %v4040_v34, %v4248_v26  ;;  %v4309_v17 = vpack.i.bf16 %v4240_v21, %v4237_v18 }
 0x279   : > { %v995_v39 = vpop.permute.xlu1 %994  ;;  %3369 = vrot.lane.b32.xlu0 %v4234_v14, %s5447_s16  ;;  %3394 = vrot.lane.b32.xlu1 %v4256_v20, %s5449_s30  ;;  %v3061_v40 = vpack.c.bf16 %v1027_v29, %v1025_v27  ;;  %v4282_v51 = vsel %vm568_vm4, 0.0, %v993_v36  ;;  %v3413_v63 = vpack.i.bf16 %v1037_v52, %v1036_v47  ;;  %v1035_v29 = vmul.f32 %v4026_v23, %v4240_v21 }
 0x27a   : > { %v4279_v53 = vsel %vm568_vm4, %v993_v36, %v995_v39  ;;  %v1028_v5 = vmul.f32 %v4002_v9, %v4282_v51  ;;  %v3418_v24 = vpack.i.bf16 %v1049_v4, %v1048_v62  ;;  %v4312_v27 = vsel %vm568_vm4, %v995_v39, 0.0 }
 0x27b   : > { %3062 = vmatprep.subr.bf16.mxu1 %v3061_v40  ;;  %v1029_v0 = vmul.f32 %v4006_v11, %v4279_v53  ;;  %v4319_v28 = vpack.i.bf16 %v4312_v27, %v4279_v53  ;;  %v1047_v31 = vmul.f32 %v4042_v35, %v4240_v21  ;;  %v1039_v36 = vmul.f32 %v4279_v53, %v4036_v32 }
 0x27c   : > { %3064 = vmatpush1.bf16.msra.mxu1 %v3063_v41  ;;  %v997_v54 = vpop.permute.xlu0 %996  ;;  %v1040_v38 = vmul.f32 %v4024_v22, %v4312_v27  ;;  %v3403_v39 = vpack.i.bf16 %v1035_v29, %v1032_v30  ;;  %v1044_v40 = vmul.f32 %v4042_v35, %v4237_v18  ;;  %v1051_v41 = vmul.f32 %v4279_v53, %v4062_v48 }
 0x27d   : > { %v4285_v57 = vsel %vm568_vm4, 0.0, %v997_v54  ;;  %3374 = vrot.lane.b32.xlu0 %v3373_v44, %s5461_s21  ;;  %3399 = vrot.lane.b32.xlu1 %v4256_v20, %s5447_s16  ;;  %v999_v58 = vpop.permute.xlu1 %998  ;;  %v1052_v47 = vmul.f32 %v4040_v34, %v4312_v27  ;;  %v4369_v62 = vmul.f32 %v4095_v8, %v4237_v18  ;;  %v4385_v4 = vmul.f32 %v4093_v7, %v4312_v27 }
 0x27e   : > { %v4291_v56 = vsel %vm568_vm4, %v997_v54, %v999_v58  ;;  %v1030_v61 = vmul.f32 %v4002_v9, %v4285_v57  ;;  %v4343_v42 = vsel %vm568_vm4, %v999_v58, 0.0  ;;  %v3408_v43 = vpack.i.bf16 %v1047_v31, %v1044_v40 }
 0x27f   : > { %v1031_v3 = vmul.f32 %v4006_v11, %v4291_v56  ;;  %v3433_v44 = vpack.i.bf16 %v1040_v38, %v1039_v36  ;;  %v4349_v52 = vpack.i.bf16 %v4285_v57, %v4282_v51  ;;  %v4353_v54 = vmul.f32 %v4227_v12, %v4101_v16 }
 0x280   : > { %v3067_v10 = vpack.c.bf16 %v1030_v61, %v1028_v5  ;;  %v4361_v58 = vmul.f32 %v4245_v25, %v4101_v16  ;;  %v4365_v61 = vmul.f32 %v4093_v7, %v4248_v26  ;;  %v3438_v5 = vpack.i.bf16 %v1052_v47, %v1051_v41 }
 0x281   : > { %3379 = vrot.lane.b32.xlu0 %v3378_v59, %s5462_s19  ;;  %3414 = vrot.lane.b32.xlu1 %v3413_v63, %s5461_s21  ;;  %v3065_v6 = vpack.c.bf16 %v1031_v3, %v1029_v0  ;;  %v4357_v59 = vmul.f32 %v4093_v7, %v4230_v13  ;;  %v4373_v63 = vmul.f32 %v4095_v8, %v4240_v21 }
 0x282   : > { %v4377_v0 = vmul.f32 %v4279_v53, %v4101_v16  ;;  %v4399_v30 = vmul.f32 %v4095_v8, %v4282_v51  ;;  %v4403_v31 = vmul.f32 %v4095_v8, %v4285_v57  ;;  %v1042_v38 = vmul.f32 %v4291_v56, %v4036_v32 }
 0x283   : > { %3066 = vmatprep.subr.bf16.mxu1 %v3065_v6  ;;  %v1057_v40 = vmul.f32 %v4227_v12, %v4068_v50  ;;  %v1058_v41 = vmul.f32 %v4045_v37, %v4230_v13  ;;  %v1038_v47 = vmul.f32 %v4026_v23, %v4282_v51  ;;  %v1053_v36 = vmul.f32 %v4042_v35, %v4285_v57 }
 0x284   : > { %3068 = vmatpush1.bf16.msra.mxu1 %v3067_v10  ;;  %v1054_v29 = vmul.f32 %v4291_v56, %v4062_v48  ;;  %v1063_v10 = vmul.f32 %v4279_v53, %v4068_v50  ;;  %v1064_v3 = vmul.f32 %v4045_v37, %v4312_v27 }
 0x285   : > { %3384 = vrot.lane.b32.xlu0 %v4309_v17, %s5449_s30  ;;  %3419 = vrot.lane.b32.xlu1 %v3418_v24, %s5462_s19  ;;  %v4393_v24 = vpack.i.bf16 %v4343_v42, %v4291_v56 }
 0x289   : > { %3389 = vrot.lane.b32.xlu0 %v4309_v17, %s5447_s16  ;;  %3424 = vrot.lane.b32.xlu1 %v4319_v28, %s5449_s30 }
 0x28d   : > { %3404 = vrot.lane.b32.xlu0 %v3403_v39, %s5461_s21  ;;  %3429 = vrot.lane.b32.xlu1 %v4319_v28, %s5447_s16  ;;  %v1043_v39 = vmul.f32 %v4024_v22, %v4343_v42 }
 0x291   : > { %3409 = vrot.lane.b32.xlu0 %v3408_v43, %s5462_s19  ;;  %3434 = vrot.lane.b32.xlu1 %v3433_v44, %s5461_s21  ;;  %v3473_v43 = vpack.i.bf16 %v1043_v39, %v1042_v38  ;;  %v1041_v44 = vmul.f32 %v4026_v23, %v4285_v57  ;;  %v1055_v38 = vmul.f32 %v4040_v34, %v4343_v42 }
 0x292   : > { %v1050_v39 = vmul.f32 %v4042_v35, %v4282_v51 }
 0x293   : > { %v3463_v1 = vpack.i.bf16 %v1041_v44, %v1038_v47  ;;  %v3488_v44 = vpack.i.bf16 %v1055_v38, %v1054_v29  ;;  %v1059_v47 = vmul.f32 %v4038_v33, %v4240_v21  ;;  %v1069_v29 = vmul.f32 %v4227_v12, %v4085_v60 }
 0x294   : > { %v1065_v38 = vmul.f32 %v4038_v33, %v4285_v57  ;;  %v1068_v12 = vmul.f32 %v4056_v45, %v4237_v18 }
 0x295   : > { %3439 = vrot.lane.b32.xlu1 %v3438_v5, %s5462_s19  ;;  %3454 = vrot.lane.b32.xlu0 %v4393_v24, %s5449_s30  ;;  %v3478_v5 = vpack.i.bf16 %v1058_v41, %v1057_v40  ;;  %v1060_v40 = vmul.f32 %v4245_v25, %v4068_v50  ;;  %v1061_v41 = vmul.f32 %v4045_v37, %v4248_v26 }
 0x299   : > { %3444 = vrot.lane.b32.xlu1 %v4349_v52, %s5449_s30  ;;  %3459 = vrot.lane.b32.xlu0 %v4393_v24, %s5447_s16 }
 0x29d   : > { %3449 = vrot.lane.b32.xlu1 %v4349_v52, %s5447_s16  ;;  %3474 = vrot.lane.b32.xlu0 %v3473_v43, %s5461_s21  ;;  %v3468_v43 = vpack.i.bf16 %v1053_v36, %v1050_v39  ;;  %v1070_v36 = vmul.f32 %v4064_v49, %v4230_v13  ;;  %v3498_v39 = vpack.i.bf16 %v1064_v3, %v1063_v10 }
 0x29e   : > { %v1073_v3 = vmul.f32 %v4064_v49, %v4248_v26  ;;  %v1067_v10 = vmul.f32 %v4045_v37, %v4343_v42 }
 0x2a1   : > { %3464 = vrot.lane.b32.xlu1 %v3463_v1, %s5461_s21  ;;  %3479 = vrot.lane.b32.xlu0 %v3478_v5, %s5463_s17  ;;  %v1056_v1 = vmul.f32 %v4038_v33, %v4237_v18  ;;  %v3483_v5 = vpack.i.bf16 %v1061_v41, %v1060_v40  ;;  %v3508_v40 = vpack.i.bf16 %v1070_v36, %v1069_v29 }
 0x2a2   : > { %v1071_v41 = vmul.f32 %v4056_v45, %v4240_v21  ;;  %v1066_v21 = vmul.f32 %v4291_v56, %v4068_v50  ;;  %v1078_v29 = vmul.f32 %v4291_v56, %v4085_v60  ;;  %v1079_v36 = vmul.f32 %v4064_v49, %v4343_v42 }
 0x2a3   : > { %v3493_v6 = vpack.i.bf16 %v1059_v47, %v1056_v1  ;;  %v1075_v1 = vmul.f32 %v4279_v53, %v4085_v60  ;;  %v1074_v53 = vmul.f32 %v4056_v45, %v4282_v51 }
 0x2a4   : > { %v3533_v18 = vpack.i.bf16 %v1067_v10, %v1066_v21 }
 0x2a5   : > { %3469 = vrot.lane.b32.xlu1 %v3468_v43, %s5462_s19  ;;  %3489 = vrot.lane.b32.xlu0 %v3488_v44, %s5462_s19  ;;  %v1062_v43 = vmul.f32 %v4038_v33, %v4282_v51  ;;  %v3518_v44 = vpack.i.bf16 %v1071_v41, %v1068_v12  ;;  %v1091_v51 = vmul.f32 %v4093_v7, %v4343_v42 }
 0x2a6   : > { %v5471_v42 = vpack.i.bf16 %v4403_v31, %v4399_v30 }
 0x2a7   : > { %v3503_v13 = vpack.i.bf16 %v1065_v38, %v1062_v43  ;;  %v3548_v38 = vpack.i.bf16 %v1079_v36, %v1078_v29 }
 0x2a9   : > { %3484 = vrot.lane.b32.xlu1 %v3483_v5, %s5463_s17  ;;  %3494 = vrot.lane.b32.xlu0 %v3493_v6, %s5463_s17  ;;  %v1072_v6 = vmul.f32 %v4245_v25, %v4085_v60  ;;  %v1076_v25 = vmul.f32 %v4064_v49, %v4312_v27  ;;  %v1077_v5 = vmul.f32 %v4056_v45, %v4285_v57  ;;  %v965_v57 = vld [vmem:[%s5421_s5 + $0x8] sm:$0xff] }
 0x2aa   : > { %1556 = vmatprep.mubr.f32.mxu1 %v965_v57 }
 0x2ab   : > { %v3513_v47 = vpack.i.bf16 %v1073_v3, %v1072_v6  ;;  %v3523_v26 = vpack.i.bf16 %v1076_v25, %v1075_v1  ;;  %v3528_v27 = vpack.i.bf16 %v1077_v5, %v1074_v53 }
 0x2ad   : > { %3499 = vrot.lane.b32.xlu1 %v3498_v39, %s5463_s17  ;;  %3509 = vrot.lane.b32.xlu0 %v3508_v40, %s5464_s22 }
 0x2b1   : > { %3504 = vrot.lane.b32.xlu1 %v3503_v13, %s5463_s17  ;;  %3519 = vrot.lane.b32.xlu0 %v3518_v44, %s5464_s22 }
 0x2b5   : > { %3514 = vrot.lane.b32.xlu1 %v3513_v47, %s5464_s22  ;;  %3534 = vrot.lane.b32.xlu0 %v3533_v18, %s5463_s17 }
 0x2b9   : > { %3524 = vrot.lane.b32.xlu1 %v3523_v26, %s5464_s22  ;;  %3539 = vrot.lane.b32.xlu0 %v4234_v14, %s5465_s23  ;;  %v5467_v14 = vpack.i.bf16 %v4357_v59, %v4353_v54  ;;  %v5470_v54 = vpack.i.bf16 %v4385_v4, %v4377_v0  ;;  %v1671_v59 = vld [vmem:[%s5422_s6 + $0x8] sm:$0xff]  ;;  %v1704_v0 = vld [vmem:[%s5423_s7 + $0x10] sm:$0xff] }
 0x2ba   : > { %v1705_v4 = vld [vmem:[%s5423_s7 + $0x18] sm:$0xff] }
 0x2bd   : > { %3529 = vrot.lane.b32.xlu1 %v3528_v27, %s5464_s22  ;;  %3549 = vrot.lane.b32.xlu0 %v3548_v38, %s5464_s22 }
 0x2c1   : > { %3544 = vrot.lane.b32.xlu1 %v4256_v20, %s5465_s23  ;;  %3554 = vrot.lane.b32.xlu0 %v4309_v17, %s5465_s23  ;;  %v1090_v20 = vmul.f32 %v4291_v56, %v4101_v16  ;;  %v5468_v17 = vpack.i.bf16 %v4365_v61, %v4361_v58  ;;  %v1670_v56 = vld [vmem:[%s5422_s6] sm:$0xff]  ;;  %v1703_v61 = vld [vmem:[%s5423_s7 + $0x8] sm:$0xff] }
 0x2c2   : > { %v1702_v58 = vld [vmem:[%s5423_s7] sm:$0xff] }
 0x2c5   : > { %3559 = vrot.lane.b32.xlu1 %v4319_v28, %s5465_s23  ;;  %3564 = vrot.lane.b32.xlu0 %v4393_v24, %s5465_s23  ;;  %v5469_v28 = vpack.i.bf16 %v4373_v63, %v4369_v62  ;;  %v1672_v62 = vld [vmem:[%s5422_s6 + $0x10] sm:$0xff]  ;;  %v1673_v63 = vld [vmem:[%s5422_s6 + $0x18] sm:$0xff] }
 0x2c9   : > { %3569 = vrot.lane.b32.xlu1 %v4349_v52, %s5465_s23  ;;  %3574 = vrot.lane.b32.xlu0 %v5467_v14, %s5466_s27  ;;  %v3593_v52 = vpack.i.bf16 %v1091_v51, %v1090_v20 }
 0x2cd   : > { %3579 = vrot.lane.b32.xlu1 %v5468_v17, %s5466_s27  ;;  %3584 = vrot.lane.b32.xlu0 %v5469_v28, %s5466_s27 }
 0x2d1   : > { %3589 = vrot.lane.b32.xlu1 %v5470_v54, %s5466_s27  ;;  %3594 = vrot.lane.b32.xlu0 %v3593_v52, %s5466_s27 }
 0x2d5   : > { %3599 = vrot.lane.b32.xlu1 %v5471_v42, %s5466_s27  ;;  %1676 = vperm.xlu0 %3362, %v1670_v56  }
 0x2d9   : > { %1681 = vperm.xlu1 %3361, %v1671_v59   ;;  %1708 = vperm.xlu0 %3362, %v1702_v58  }
 0x2dd   : > { %1713 = vperm.xlu1 %3361, %v1703_v61   ;;  %1686 = vperm.xlu0 %3362, %v1672_v62  }
 0x2e1   : > { %1691 = vperm.xlu1 %3361, %v1673_v63   ;;  %1718 = vperm.xlu0 %3362, %v1704_v0  }
 0x2e5   : > { %1723 = vperm.xlu1 %3361, %v1705_v4  }
 0x2e7   : > { %v3365_v24 = vpop.permute.xlu0 %3364 }
 0x2e8   : > { %v3367_v30 = vunpack.i.h.bf16 %v3365_v24  ;;  %v3366_v31 = vunpack.i.l.bf16 %v3365_v24 }
 0x2ea   : > { %v1125_v12 = vsel %vm652_vm12, %v3366_v31, %v3367_v30 }
 0x2eb   : > { %v4560_v39 = vpop.permute.xlu0 %3369  ;;  %v3395_v40 = vpop.permute.xlu1 %3394 }
 0x2ec   : > { %v3397_v41 = vunpack.i.h.bf16 %v3395_v40  ;;  %v3396_v43 = vunpack.i.l.bf16 %v3395_v40 }
 0x2ee   : > { %v1127_v13 = vsel %vm652_vm12, %v3396_v43, %v3397_v41 }
 0x2ef   : > { %v3375_v6 = vpop.permute.xlu0 %3374  ;;  %v4564_v44 = vpop.permute.xlu1 %3399  ;;  %v3069_v3 = vpack.c.bf16 %v1127_v13, %v1125_v12 }
 0x2f0   : > { %v3377_v59 = vunpack.i.h.bf16 %v3375_v6  ;;  %v3376_v58 = vunpack.i.l.bf16 %v3375_v6 }
 0x2f1   : > { %3070 = vmatprep.subr.bf16.mxu1 %v3069_v3 }
 0x2f3   : > { %v4566_v21 = vpop.permute.xlu0 %3379  ;;  %v3415_v10 = vpop.permute.xlu1 %3414 }
 0x2f4   : > { %v3417_v17 = vunpack.i.h.bf16 %v3415_v10  ;;  %v3416_v28 = vunpack.i.l.bf16 %v3415_v10 }
 0x2f6   : > { %v1179_v24 = vsel %vm669_vm14, %v3416_v28, %v3417_v17 }
 0x2f7   : > { %v3385_v47 = vpop.permute.xlu0 %3384  ;;  %v4568_v18 = vpop.permute.xlu1 %3419 }
 0x2f8   : > { %v3387_v1 = vunpack.i.h.bf16 %v3385_v47  ;;  %v3386_v25 = vunpack.i.l.bf16 %v3385_v47  ;;  %v3422_v10 = vunpack.i.h.bf16 %v4568_v18  ;;  %v3421_v47 = vunpack.i.l.bf16 %v4568_v18 }
 0x2fa   : > { %v1124_v26 = vsel %vm652_vm12, %v3386_v25, %v3366_v31  ;;  %v1126_v5 = vsel %vm652_vm12, %v3387_v1, %v3396_v43  ;;  %v1177_v43 = vsel %vm669_vm14, %v3376_v58, %v3377_v59 }
 0x2fb   : > { %v4572_v29 = vpop.permute.xlu0 %3389  ;;  %v3425_v36 = vpop.permute.xlu1 %3424  ;;  %v3071_v53 = vpack.c.bf16 %v1126_v5, %v1124_v26  ;;  %v3077_v5 = vpack.c.bf16 %v1179_v24, %v1177_v43 }
 0x2fc   : > { %v3427_v20 = vunpack.i.h.bf16 %v3425_v36  ;;  %v3426_v51 = vunpack.i.l.bf16 %v3425_v36 }
 0x2fd   : > { %3072 = vmatpush1.bf16.msra.mxu1 %v3071_v53 }
 0x2fe   : > { %v1129_v61 = vsel %vm652_vm12, %v3426_v51, %v3427_v20 }
 0x2ff   : > { %v3405_v27 = vpop.permute.xlu0 %3404  ;;  %v4574_v38 = vpop.permute.xlu1 %3429 }
 0x300   : > { %v3407_v30 = vunpack.i.h.bf16 %v3405_v27  ;;  %v3406_v31 = vunpack.i.l.bf16 %v3405_v27 }
 0x302   : > { %v1176_v27 = vsel %vm669_vm14, %v3406_v31, %v3376_v58  ;;  %v1178_v20 = vsel %vm669_vm14, %v3407_v30, %v3416_v28 }
 0x303   : > { %v4576_v57 = vpop.permute.xlu0 %3409  ;;  %v3435_v14 = vpop.permute.xlu1 %3434  ;;  %v3079_v58 = vpack.c.bf16 %v1178_v20, %v1176_v27  ;;  %v3392_v20 = vunpack.i.h.bf16 %v4572_v29 }
 0x304   : > { %v3437_v12 = vunpack.i.h.bf16 %v3435_v14  ;;  %v3436_v13 = vunpack.i.l.bf16 %v3435_v14  ;;  %v3382_v14 = vunpack.i.h.bf16 %v4566_v21 }
 0x306   : > { %v1181_v17 = vsel %vm669_vm14, %v3436_v13, %v3437_v12 }
 0x307   : > { %v3455_v52 = vpop.permute.xlu0 %3454  ;;  %v4578_v54 = vpop.permute.xlu1 %3439 }
 0x308   : > { %v3457_v56 = vunpack.i.h.bf16 %v3455_v52  ;;  %v3456_v42 = vunpack.i.l.bf16 %v3455_v52  ;;  %v3412_v52 = vunpack.i.h.bf16 %v4576_v57  ;;  %v3442_v30 = vunpack.i.h.bf16 %v4578_v54 }
 0x30a   : > { %v1131_v62 = vsel %vm652_vm12, %v3456_v42, %v3457_v56  ;;  %v3411_v56 = vunpack.i.l.bf16 %v4576_v57  ;;  %v3441_v57 = vunpack.i.l.bf16 %v4578_v54  ;;  %v3371_v54 = vunpack.i.l.bf16 %v4560_v39 }
 0x30b   : > { %v4582_v63 = vpop.permute.xlu0 %3459  ;;  %v3445_v0 = vpop.permute.xlu1 %3444  ;;  %v3073_v4 = vpack.c.bf16 %v1131_v62, %v1129_v61 }
 0x30c   : > { %v3447_v40 = vunpack.i.h.bf16 %v3445_v0  ;;  %v3446_v41 = vunpack.i.l.bf16 %v3445_v0  ;;  %v1231_v0 = vsel %vm686_vm10, %v3421_v47, %v3422_v10 }
 0x30d   : > { %3074 = vmatprep.subr.bf16.mxu1 %v3073_v4  ;;  %v3401_v4 = vunpack.i.l.bf16 %v4564_v44 }
 0x30e   : > { %v1128_v6 = vsel %vm652_vm12, %v3446_v41, %v3426_v51  ;;  %v1130_v3 = vsel %vm652_vm12, %v3447_v40, %v3456_v42  ;;  %v3381_v51 = vunpack.i.l.bf16 %v4566_v21  ;;  %v3402_v21 = vunpack.i.h.bf16 %v4564_v44 }
 0x30f   : > { %v3475_v1 = vpop.permute.xlu0 %3474  ;;  %v4590_v25 = vpop.permute.xlu1 %3449  ;;  %v3075_v26 = vpack.c.bf16 %v1130_v3, %v1128_v6  ;;  %v1230_v44 = vsel %vm686_vm10, %v3412_v52, %v3421_v47 }
 0x310   : > { %v3477_v36 = vunpack.i.h.bf16 %v3475_v1  ;;  %v3476_v53 = vunpack.i.l.bf16 %v3475_v1  ;;  %v1229_v24 = vsel %vm686_vm10, %v3381_v51, %v3382_v14  ;;  %v1228_v3 = vsel %vm686_vm10, %v3411_v56, %v3381_v51 }
 0x311   : > { %3076 = vmatpush1.bf16.msra.mxu1 %v3075_v26  ;;  %v3085_v6 = vpack.c.bf16 %v1231_v0, %v1229_v24  ;;  %v3087_v51 = vpack.c.bf16 %v1230_v44, %v1228_v3  ;;  %v3462_v56 = vunpack.i.h.bf16 %v4582_v63 }
 0x312   : > { %3078 = vmatprep.subr.bf16.mxu1 %v3077_v5  ;;  %v1183_v18 = vsel %vm669_vm14, %v3476_v53, %v3477_v36  ;;  %v3372_v36 = vunpack.i.h.bf16 %v4560_v39 }
 0x313   : > { %v4600_v42 = vpop.permute.xlu0 %3479  ;;  %v3465_v59 = vpop.permute.xlu1 %3464  ;;  %v3081_v61 = vpack.c.bf16 %v1183_v18, %v1181_v17  ;;  %v1271_v18 = vsel %vm700_vm13, %v3401_v4, %v3402_v21 }
 0x314   : > { %v3467_v28 = vunpack.i.h.bf16 %v3465_v59  ;;  %v3466_v62 = vunpack.i.l.bf16 %v3465_v59  ;;  %v3461_v59 = vunpack.i.l.bf16 %v4582_v63  ;;  %v3451_v63 = vunpack.i.l.bf16 %v4590_v25 }
 0x315   : > { %3080 = vmatpush1.bf16.msra.mxu1 %v3079_v58  ;;  %v1269_v58 = vsel %vm700_vm13, %v3371_v54, %v3372_v36 }
 0x316   : > { %3082 = vmatprep.subr.bf16.mxu1 %v3081_v61  ;;  %v1180_v31 = vsel %vm669_vm14, %v3466_v62, %v3436_v13  ;;  %v1182_v40 = vsel %vm669_vm14, %v3467_v28, %v3476_v53  ;;  %v3391_v13 = vunpack.i.l.bf16 %v4572_v29  ;;  %v1233_v53 = vsel %vm686_vm10, %v3441_v57, %v3442_v30 }
 0x317   : > { %v3490_v41 = vpop.permute.xlu0 %3489  ;;  %v3470_v43 = vpop.permute.xlu1 %3469  ;;  %v3083_v12 = vpack.c.bf16 %v1182_v40, %v1180_v31  ;;  %v3093_v61 = vpack.c.bf16 %v1271_v18, %v1269_v58  ;;  %v3432_v28 = vunpack.i.h.bf16 %v4574_v38  ;;  %v3431_v62 = vunpack.i.l.bf16 %v4574_v38 }
 0x318   : > { %v3492_v10 = vunpack.i.h.bf16 %v3490_v41  ;;  %v3491_v1 = vunpack.i.l.bf16 %v3490_v41  ;;  %v3472_v26 = vunpack.i.h.bf16 %v3470_v43  ;;  %v3471_v5 = vunpack.i.l.bf16 %v3470_v43 }
 0x319   : > { %3084 = vmatpush1.bf16.msra.mxu1 %v3083_v12  ;;  %v1268_v29 = vsel %vm700_vm13, %v3391_v13, %v3371_v54  ;;  %v1270_v30 = vsel %vm700_vm13, %v3392_v20, %v3401_v4  ;;  %v1275_v41 = vsel %vm700_vm13, %v3461_v59, %v3462_v56  ;;  %v3482_v43 = vunpack.i.h.bf16 %v4600_v42 }
 0x31a   : > { %3086 = vmatprep.subr.bf16.mxu1 %v3085_v6  ;;  %v1235_v27 = vsel %vm686_vm10, %v3491_v1, %v3492_v10  ;;  %v1232_v52 = vsel %vm686_vm10, %v3471_v5, %v3441_v57  ;;  %v1234_v39 = vsel %vm686_vm10, %v3472_v26, %v3491_v1  ;;  %v3452_v57 = vunpack.i.h.bf16 %v4590_v25 }
 0x31b   : > { %v3495_v14 = vpop.permute.xlu0 %3494  ;;  %v3485_v47 = vpop.permute.xlu1 %3484  ;;  %v3089_v17 = vpack.c.bf16 %v1235_v27, %v1233_v53  ;;  %v3091_v24 = vpack.c.bf16 %v1234_v39, %v1232_v52  ;;  %v3481_v12 = vunpack.i.l.bf16 %v4600_v42  ;;  %v3095_v10 = vpack.c.bf16 %v1270_v30, %v1268_v29 }
 0x31c   : > { %v3487_v31 = vunpack.i.h.bf16 %v3485_v47  ;;  %v3486_v40 = vunpack.i.l.bf16 %v3485_v47  ;;  %v3497_v38 = vunpack.i.h.bf16 %v3495_v14  ;;  %v3496_v6 = vunpack.i.l.bf16 %v3495_v14 }
 0x31d   : > { %3088 = vmatpush1.bf16.msra.mxu1 %v3087_v51  ;;  %v1273_v4 = vsel %vm700_vm13, %v3431_v62, %v3432_v28  ;;  %v1272_v25 = vsel %vm700_vm13, %v3451_v63, %v3431_v62  ;;  %v1274_v26 = vsel %vm700_vm13, %v3452_v57, %v3461_v59  ;;  %v1321_v42 = vsel %vm717_vm0, %v3481_v12, %v3482_v43 }
 0x31e   : > { %3090 = vmatprep.subr.bf16.mxu1 %v3089_v17  ;;  %v3097_v1 = vpack.c.bf16 %v1275_v41, %v1273_v4  ;;  %v1323_v5 = vsel %vm717_vm0, %v3486_v40, %v3487_v31  ;;  %v3099_v27 = vpack.c.bf16 %v1274_v26, %v1272_v25  ;;  %v1320_v14 = vsel %vm717_vm0, %v3496_v6, %v3481_v12 }
 0x31f   : > { %v4627_v0 = vpop.permute.xlu0 %3509  ;;  %v3500_v21 = vpop.permute.xlu1 %3499  ;;  %v3101_v20 = vpack.c.bf16 %v1323_v5, %v1321_v42  ;;  %v1322_v47 = vsel %vm717_vm0, %v3497_v38, %v3486_v40 }
 0x320   : > { %v3502_v36 = vunpack.i.h.bf16 %v3500_v21  ;;  %v3501_v54 = vunpack.i.l.bf16 %v3500_v21  ;;  %v3512_v39 = vunpack.i.h.bf16 %v4627_v0  ;;  %v3511_v56 = vunpack.i.l.bf16 %v4627_v0 }
 0x321   : > { %3092 = vmatpush1.bf16.msra.mxu1 %v3091_v24  ;;  %v3103_v21 = vpack.c.bf16 %v1322_v47, %v1320_v14 }
 0x322   : > { %3094 = vmatprep.subr.bf16.mxu1 %v3093_v61  ;;  %v1325_v61 = vsel %vm717_vm0, %v3501_v54, %v3502_v36  ;;  %v1373_v43 = vsel %vm734_vm11, %v3511_v56, %v3512_v39 }
 0x323   : > { %v3520_v3 = vpop.permute.xlu0 %3519  ;;  %v3505_v44 = vpop.permute.xlu1 %3504 }
 0x324   : > { %v3507_v59 = vunpack.i.h.bf16 %v3505_v44  ;;  %v3506_v58 = vunpack.i.l.bf16 %v3505_v44  ;;  %v3522_v63 = vunpack.i.h.bf16 %v3520_v3  ;;  %v3521_v31 = vunpack.i.l.bf16 %v3520_v3 }
 0x325   : > { %3096 = vmatpush1.bf16.msra.mxu1 %v3095_v10 }
 0x326   : > { %3098 = vmatprep.subr.bf16.mxu1 %v3097_v1  ;;  %v1324_v41 = vsel %vm717_vm0, %v3506_v58, %v3501_v54  ;;  %v1372_v3 = vsel %vm734_vm11, %v3521_v31, %v3511_v56 }
 0x327   : > { %v3535_v13 = vpop.permute.xlu0 %3534  ;;  %v3515_v53 = vpop.permute.xlu1 %3514 }
 0x328   : > { %v3537_v51 = vunpack.i.h.bf16 %v3535_v13  ;;  %v3536_v17 = vunpack.i.l.bf16 %v3535_v13  ;;  %v3517_v18 = vunpack.i.h.bf16 %v3515_v53  ;;  %v3516_v52 = vunpack.i.l.bf16 %v3515_v53 }
 0x329   : > { %3100 = vmatpush1.bf16.msra.mxu1 %v3099_v27 }
 0x32a   : > { %3102 = vmatprep.subr.bf16.mxu1 %v3101_v20  ;;  %v1327_v29 = vsel %vm717_vm0, %v3536_v17, %v3537_v51  ;;  %v1326_v30 = vsel %vm717_vm0, %v3507_v59, %v3536_v17  ;;  %v1375_v57 = vsel %vm734_vm11, %v3516_v52, %v3517_v18  ;;  %v1374_v10 = vsel %vm734_vm11, %v3522_v63, %v3516_v52 }
 0x32b   : > { %v3540_v28 = vpop.permute.xlu0 %3539  ;;  %v3525_v62 = vpop.permute.xlu1 %3524  ;;  %v3105_v24 = vpack.c.bf16 %v1327_v29, %v1325_v61  ;;  %v3107_v6 = vpack.c.bf16 %v1326_v30, %v1324_v41  ;;  %v3109_v44 = vpack.c.bf16 %v1375_v57, %v1373_v43  ;;  %v3111_v27 = vpack.c.bf16 %v1374_v10, %v1372_v3 }
 0x32c   : > { %v3527_v0 = vunpack.i.h.bf16 %v3525_v62  ;;  %v3526_v40 = vunpack.i.l.bf16 %v3525_v62  ;;  %v3542_v5 = vunpack.i.h.bf16 %v3540_v28  ;;  %v3541_v36 = vunpack.i.l.bf16 %v3540_v28 }
 0x32d   : > { %3104 = vmatpush1.bf16.msra.mxu1 %v3103_v21 }
 0x32e   : > { %3106 = vmatprep.subr.bf16.mxu1 %v3105_v24  ;;  %v1377_v54 = vsel %vm734_vm11, %v3526_v40, %v3527_v0  ;;  %v1413_v39 = vsel %vm748_vm2, %v3541_v36, %v3542_v5 }
 0x32f   : > { %v3550_v12 = vpop.permute.xlu0 %3549  ;;  %v3530_v38 = vpop.permute.xlu1 %3529 }
 0x330   : > { %v3552_v4 = vunpack.i.h.bf16 %v3550_v12  ;;  %v3551_v1 = vunpack.i.l.bf16 %v3550_v12  ;;  %v3532_v25 = vunpack.i.h.bf16 %v3530_v38  ;;  %v3531_v26 = vunpack.i.l.bf16 %v3530_v38 }
 0x331   : > { %3108 = vmatpush1.bf16.msra.mxu1 %v3107_v6 }
 0x332   : > { %3110 = vmatprep.subr.bf16.mxu1 %v3109_v44  ;;  %v1379_v42 = vsel %vm734_vm11, %v3551_v1, %v3552_v4  ;;  %v1376_v14 = vsel %vm734_vm11, %v3531_v26, %v3526_v40  ;;  %v1378_v47 = vsel %vm734_vm11, %v3532_v25, %v3551_v1 }
 0x333   : > { %v3555_v13 = vpop.permute.xlu0 %3554  ;;  %v3545_v53 = vpop.permute.xlu1 %3544  ;;  %v3113_v20 = vpack.c.bf16 %v1379_v42, %v1377_v54  ;;  %v3115_v61 = vpack.c.bf16 %v1378_v47, %v1376_v14  ;;  %v964_v42 = vld [vmem:[%s5421_s5] sm:$0xff] }
 0x334   : > { %v3557_v51 = vunpack.i.h.bf16 %v3555_v13  ;;  %v3556_v17 = vunpack.i.l.bf16 %v3555_v13  ;;  %v3547_v18 = vunpack.i.h.bf16 %v3545_v53  ;;  %v3546_v52 = vunpack.i.l.bf16 %v3545_v53  ;;  %v968_v14 = vld [vmem:[%s5421_s5 + $0x20] sm:$0xff] }
 0x335   : > { %3112 = vmatpush1.bf16.msra.mxu1 %v3111_v27 }
 0x336   : > { %3114 = vmatprep.subr.bf16.mxu1 %v3113_v20  ;;  %v1415_v56 = vsel %vm748_vm2, %v3546_v52, %v3547_v18  ;;  %v1412_v28 = vsel %vm748_vm2, %v3556_v17, %v3541_v36  ;;  %v1414_v62 = vsel %vm748_vm2, %v3557_v51, %v3546_v52 }
 0x337   : > { %v3565_v59 = vpop.permute.xlu0 %3564  ;;  %v3560_v58 = vpop.permute.xlu1 %3559  ;;  %v3117_v29 = vpack.c.bf16 %v1415_v56, %v1413_v39  ;;  %v3119_v41 = vpack.c.bf16 %v1414_v62, %v1412_v28  ;;  %v971_v28 = vld [vmem:[%s5421_s5 + $0x38] sm:$0xff] }
 0x338   : > { %v3567_v21 = vunpack.i.h.bf16 %v3565_v59  ;;  %v3566_v24 = vunpack.i.l.bf16 %v3565_v59  ;;  %v3562_v30 = vunpack.i.h.bf16 %v3560_v58  ;;  %v3561_v57 = vunpack.i.l.bf16 %v3560_v58  ;;  %v967_v58 = vld [vmem:[%s5421_s5 + $0x18] sm:$0xff] }
 0x339   : > { %3116 = vmatpush1.bf16.msra.mxu1 %v3115_v61 }
 0x33a   : > { %3118 = vmatprep.subr.bf16.mxu1 %v3117_v29  ;;  %v1417_v63 = vsel %vm748_vm2, %v3561_v57, %v3562_v30  ;;  %v1419_v31 = vsel %vm748_vm2, %v3566_v24, %v3567_v21 }
 0x33b   : > { %v3575_v0 = vpop.permute.xlu0 %3574  ;;  %v3570_v40 = vpop.permute.xlu1 %3569  ;;  %v3121_v43 = vpack.c.bf16 %v1419_v31, %v1417_v63 }
 0x33c   : > { %v3572_v12 = vunpack.i.h.bf16 %v3570_v40  ;;  %v3571_v38 = vunpack.i.l.bf16 %v3570_v40  ;;  %v3577_v6 = vunpack.i.h.bf16 %v3575_v0  ;;  %v3576_v44 = vunpack.i.l.bf16 %v3575_v0  ;;  %v974_v0 = vld [vmem:[%s5421_s5 + $0x50] sm:$0xff] }
 0x33d   : > { %3120 = vmatpush1.bf16.msra.mxu1 %v3119_v41  ;;  %v973_v41 = vld [vmem:[%s5421_s5 + $0x48] sm:$0xff] }
 0x33e   : > { %3122 = vmatprep.subr.bf16.mxu1 %v3121_v43  ;;  %v1416_v10 = vsel %vm748_vm2, %v3571_v38, %v3561_v57  ;;  %v1418_v4 = vsel %vm748_vm2, %v3572_v12, %v3566_v24  ;;  %v1465_v27 = vsel %vm762_vm6, %v3576_v44, %v3577_v6  ;;  %v970_v57 = vld [vmem:[%s5421_s5 + $0x30] sm:$0xff]  ;;  %v5472_v43 = vmov 0.0   ;;  %v969_v38 = vld [vmem:[%s5421_s5 + $0x28] sm:$0xff]  ;;  %v972_v6 = vld [vmem:[%s5421_s5 + $0x40] sm:$0xff] }
 0x33f   : > { %v3585_v1 = vpop.permute.xlu0 %3584  ;;  %v3580_v25 = vpop.permute.xlu1 %3579  ;;  %v3123_v26 = vpack.c.bf16 %v1418_v4, %v1416_v10  ;;  %v966_v12 = vld [vmem:[%s5421_s5 + $0x10] sm:$0xff] }
 0x340   : > { %v3587_v3 = vunpack.i.h.bf16 %v3585_v1  ;;  %v3586_v5 = vunpack.i.l.bf16 %v3585_v1  ;;  %v3582_v36 = vunpack.i.h.bf16 %v3580_v25  ;;  %v3581_v54 = vunpack.i.l.bf16 %v3580_v25 }
 0x341   : > { %3124 = vmatpush1.bf16.msra.mxu1 %v3123_v26 }
 0x342   : > { %v1464_v13 = vsel %vm762_vm6, %v3586_v5, %v3576_v44  ;;  %v1466_v53 = vsel %vm762_vm6, %v3587_v3, %v3581_v54  ;;  %v1467_v20 = vsel %vm762_vm6, %v3581_v54, %v3582_v36  ;;  %v975_v44 = vld [vmem:[%s5421_s5 + $0x58] sm:$0xff] }
 0x343   : > { %v3127_v47 = vpack.c.bf16 %v1466_v53, %v1464_v13  ;;  %v3595_v51 = vpop.permute.xlu0 %3594  ;;  %v3590_v17 = vpop.permute.xlu1 %3589  ;;  %v3125_v18 = vpack.c.bf16 %v1467_v20, %v1465_v27 }
 0x344   : > { %v3597_v52 = vunpack.i.h.bf16 %v3595_v51  ;;  %v3596_v39 = vunpack.i.l.bf16 %v3595_v51  ;;  %v3592_v56 = vunpack.i.h.bf16 %v3590_v17  ;;  %v3591_v59 = vunpack.i.l.bf16 %v3590_v17  ;;  %1557 = vmatmul.mubr.f32.vlgmr.msra.gmra.mrb[0].mxu1 %v964_v42 }
 0x345   : > { %3126 = vmatprep.subr.bf16.mxu1 %v3125_v18  ;;  %1562 = vmatprep.mubr.f32.mxu1 %v968_v14 }
 0x346   : > { %3128 = vmatpush1.bf16.msra.mxu1 %v3127_v47  ;;  %v1469_v61 = vsel %vm762_vm6, %v3591_v59, %v3592_v56  ;;  %v1471_v29 = vsel %vm762_vm6, %v3596_v39, %v3597_v52 }
 0x347   : > { %v3600_v62 = vpop.permute.xlu1 %3599  ;;  %v3129_v21 = vpack.c.bf16 %v1471_v29, %v1469_v61 }
 0x348   : > { %v3602_v24 = vunpack.i.h.bf16 %v3600_v62  ;;  %v3601_v30 = vunpack.i.l.bf16 %v3600_v62  ;;  %1563 = vmatmul.mubr.f32.gmra.mrb[2].mxu1 %v967_v58 }
 0x349   : > { %3130 = vmatprep.subr.bf16.mxu1 %v3129_v21  ;;  %1568 = vmatprep.mubr.f32.mxu1 %v971_v28 }
 0x34a   : > { %v1470_v63 = vsel %vm762_vm6, %v3602_v24, %v3596_v39  ;;  %v1468_v31 = vsel %vm762_vm6, %v3601_v30, %v3591_v59 }
 0x34b   : > { %v3131_v40 = vpack.c.bf16 %v1470_v63, %v1468_v31 }
 0x34c   : > { %1569 = vmatmul.mubr.f32.gmra.mrb[4].mxu1 %v970_v57 }
 0x34d   : > { %3132 = vmatpush1.bf16.msra.mxu1 %v3131_v40  ;;  %1574 = vmatprep.mubr.f32.mxu1 %v974_v0 }
 0x350   : > { %1575 = vmatmul.mubr.f32.gmra.mrb[6].mxu1 %v973_v41 }
 0x351   : > { %1645 = vmatprep.mubr.f32.mxu1 %v5472_v43 }
 0x354   : > { %3028 = vmatmul.mubr.msk.f32.vlgmr.msra.gmra.mrb[0].mxu1 %vm5473_vm8, %v966_v12  ;;  %v1677_v10 = vpop.permute.xlu0 %1676 }
 0x355   : > { %1651 = vmatprep.mubr.f32.mxu1 %v5472_v43 }
 0x358   : > { %3029 = vmatmul.mubr.msk.f32.gmra.mrb[2].mxu1 %vm5474_vm5, %v969_v38  ;;  %v1682_v4 = vpop.permute.xlu1 %1681  ;;  %v1709_v1 = vpop.permute.xlu0 %1708 }
 0x359   : > { %1657 = vmatprep.mubr.f32.mxu1 %v5472_v43 }
 0x35c   : > { %3030 = vmatmul.mubr.msk.f32.gmra.mrb[4].mxu1 %vm5475_vm7, %v972_v6  ;;  %v1714_v5 = vpop.permute.xlu1 %1713  ;;  %v1687_v42 = vpop.permute.xlu0 %1686 }
 0x35d   : > { %1663 = vmatprep.mubr.f32.mxu1 %v5472_v43 }
 0x360   : > { %3031 = vmatmul.mubr.msk.f32.gmra.mrb[6].mxu1 %vm5476_vm9, %v975_v44  ;;  %v1692_v18 = vpop.permute.xlu1 %1691  ;;  %v1719_v61 = vpop.permute.xlu0 %1718  ;;  %v552_v44 = vld [vmem:[%s506_s29] sm:$0xff] }
 0x361   : > { %2645 = vmatprep.mubr.f32.mxu1 %v5472_v43 }
 0x364   : > { %v1724_v31 = vpop.permute.xlu1 %1723 }
 0x427   : > { %v1647_v25 = vpop.f32.mrb[0].mxu1 }
 0x428   : > { %v1694_v26 = vmul.f32 %v1677_v10, %v1647_v25  ;;  %v1649_v3 = vpop.f32.mrb[1].mxu1 }
 0x429   : > { %v1695_v36 = vmul.f32 %v1677_v10, %v1649_v3 }
 0x42a   : > { %v1726_v54 = vadd.f32 %v1709_v1, %v1694_v26 }
 0x42b   : > { %v1727_v13 = vadd.f32 %v1709_v1, %v1695_v36  ;;  %v1653_v53 = vpop.f32.mrb[2].mxu1 }
 0x42c   : > { %v1734_v27 = vmax.f32 %v1726_v54, 0.0  ;;  %v1696_v20 = vmul.f32 %v1682_v4, %v1653_v53  ;;  %v1655_v14 = vpop.f32.mrb[3].mxu1 }
 0x42d   : > { %v1735_v47 = vmax.f32 %v1727_v13, 0.0  ;;  %v1697_v51 = vmul.f32 %v1682_v4, %v1655_v14 }
 0x42e   : > { %v1728_v17 = vadd.f32 %v1714_v5, %v1696_v20  ;;  %1882 = vrot.lane.b32.xlu0 %v1734_v27, %s5477_s3 }
 0x42f   : > { %v1729_v52 = vadd.f32 %v1714_v5, %v1697_v51  ;;  %1884 = vrot.lane.b32.xlu1 %v1735_v47, %s5477_s3  ;;  %v1659_v39 = vpop.f32.mrb[4].mxu1 }
 0x430   : > { %v1736_v56 = vmax.f32 %v1728_v17, 0.0  ;;  %v1698_v59 = vmul.f32 %v1687_v42, %v1659_v39  ;;  %v1661_v58 = vpop.f32.mrb[5].mxu1 }
 0x431   : > { %v1737_v29 = vmax.f32 %v1729_v52, 0.0  ;;  %v1699_v28 = vmul.f32 %v1687_v42, %v1661_v58 }
 0x432   : > { %v1730_v62 = vadd.f32 %v1719_v61, %v1698_v59  ;;  %1886 = vrot.lane.b32.xlu0 %v1736_v56, %s5477_s3 }
 0x433   : > { %v1731_v21 = vadd.f32 %v1719_v61, %v1699_v28  ;;  %1888 = vrot.lane.b32.xlu1 %v1737_v29, %s5477_s3  ;;  %v1665_v24 = vpop.f32.mrb[6].mxu1 }
 0x434   : > { %v1738_v30 = vmax.f32 %v1730_v62, 0.0  ;;  %v1700_v57 = vmul.f32 %v1692_v18, %v1665_v24  ;;  %v1667_v63 = vpop.f32.mrb[7].mxu1 }
 0x435   : > { %v1739_v0 = vmax.f32 %v1731_v21, 0.0  ;;  %v1701_v40 = vmul.f32 %v1692_v18, %v1667_v63 }
 0x436   : > { %v1732_v41 = vadd.f32 %v1724_v31, %v1700_v57  ;;  %1890 = vrot.lane.b32.xlu0 %v1738_v30, %s5477_s3 }
 0x437   : > { %v1733_v12 = vadd.f32 %v1724_v31, %v1701_v40  ;;  %1892 = vrot.lane.b32.xlu1 %v1739_v0, %s5477_s3 }
 0x438   : > { %v1740_v38 = vmax.f32 %v1732_v41, 0.0 }
 0x439   : > { %v1741_v6 = vmax.f32 %v1733_v12, 0.0 }
 0x43a   : > { %1894 = vrot.lane.b32.xlu0 %v1740_v38, %s5477_s3 }
 0x43b   : > { %1896 = vrot.lane.b32.xlu1 %v1741_v6, %s5477_s3 }
 0x43f   : > { %555 = vperm.xlu1 %3361, %v552_v44  }
 0x4a0   : > { %v1883_v10 = vpop.permute.xlu0 %1882 }
 0x4a1   : > { %v1885_v4 = vpop.permute.xlu1 %1884  ;;  %v4741_v54 = vsel %vm568_vm4, 0.0, %v1883_v10 }
 0x4a2   : > { %v4727_v1 = vsel %vm568_vm4, %v1883_v10, %v1885_v4  ;;  %v4730_v25 = vsel %vm568_vm4, %v1885_v4, 0.0  ;;  %v1922_v56 = vmul.f32 %v4002_v9, %v4741_v54 }
 0x4a3   : > { %v4734_v26 = vpack.i.bf16 %v4730_v25, %v4727_v1  ;;  %v1931_v3 = vmul.f32 %v4727_v1, %v4036_v32  ;;  %v1932_v5 = vmul.f32 %v4024_v22, %v4730_v25  ;;  %v1923_v20 = vmul.f32 %v4006_v11, %v4727_v1 }
 0x4a4   : > { %v1887_v36 = vpop.permute.xlu0 %1886  ;;  %v1943_v17 = vmul.f32 %v4727_v1, %v4062_v48  ;;  %v1944_v18 = vmul.f32 %v4040_v34, %v4730_v25  ;;  %v1955_v61 = vmul.f32 %v4727_v1, %v4068_v50  ;;  %v1956_v29 = vmul.f32 %v4045_v37, %v4730_v25 }
 0x4a5   : > { %v4744_v42 = vsel %vm568_vm4, 0.0, %v1887_v36  ;;  %v1889_v13 = vpop.permute.xlu1 %1888  ;;  %3604 = vrot.lane.b32.xlu0 %v4734_v26, %s5478_s25  ;;  %3609 = vrot.lane.b32.xlu1 %v4734_v26, %s5479_s26  ;;  %v3613_v47 = vpack.i.bf16 %v1932_v5, %v1931_v3  ;;  %v1967_v12 = vmul.f32 %v4727_v1, %v4085_v60 }
 0x4a6   : > { %v4751_v53 = vsel %vm568_vm4, %v1887_v36, %v1889_v13  ;;  %v4755_v27 = vpack.i.bf16 %v4744_v42, %v4741_v54  ;;  %v1924_v14 = vmul.f32 %v4002_v9, %v4744_v42  ;;  %v4768_v52 = vsel %vm568_vm4, %v1889_v13, 0.0 }
 0x4a7   : > { %v1925_v51 = vmul.f32 %v4006_v11, %v4751_v53  ;;  %v4781_v62 = vpack.i.bf16 %v4768_v52, %v4751_v53  ;;  %v3618_v21 = vpack.i.bf16 %v1944_v18, %v1943_v17  ;;  %v1934_v24 = vmul.f32 %v4751_v53, %v4036_v32 }
 0x4a8   : > { %v1891_v39 = vpop.permute.xlu0 %1890  ;;  %v3135_v28 = vpack.c.bf16 %v1924_v14, %v1922_v56  ;;  %v1935_v30 = vmul.f32 %v4024_v22, %v4768_v52  ;;  %v3623_v41 = vpack.i.bf16 %v1956_v29, %v1955_v61  ;;  %v1946_v44 = vmul.f32 %v4751_v53, %v4062_v48 }
 0x4a9   : > { %v1893_v59 = vpop.permute.xlu1 %1892  ;;  %3634 = vrot.lane.b32.xlu0 %v4755_v27, %s5478_s25  ;;  %3614 = vrot.lane.b32.xlu1 %v3613_v47, %s5461_s21  ;;  %v3133_v58 = vpack.c.bf16 %v1925_v51, %v1923_v20  ;;  %v4791_v31 = vsel %vm568_vm4, 0.0, %v1891_v39  ;;  %v1947_v10 = vmul.f32 %v4040_v34, %v4768_v52  ;;  %v1968_v36 = vmul.f32 %v4064_v49, %v4730_v25 }
 0x4aa   : > { %v4788_v57 = vsel %vm568_vm4, %v1891_v39, %v1893_v59  ;;  %v3668_v4 = vpack.i.bf16 %v1935_v30, %v1934_v24  ;;  %v1926_v13 = vmul.f32 %v4002_v9, %v4791_v31  ;;  %v1958_v17 = vmul.f32 %v4751_v53, %v4068_v50 }
 0x4ab   : > { %3134 = vmatprep.subr.bf16.mxu0 %v3133_v58  ;;  %v1927_v3 = vmul.f32 %v4006_v11, %v4788_v57  ;;  %v3673_v47 = vpack.i.bf16 %v1947_v10, %v1946_v44  ;;  %v3628_v51 = vpack.i.bf16 %v1968_v36, %v1967_v12  ;;  %v1959_v18 = vmul.f32 %v4045_v37, %v4768_v52 }
 0x4ac   : > { %3136 = vmatpush1.bf16.msra.mxu0 %v3135_v28  ;;  %v1895_v63 = vpop.permute.xlu0 %1894  ;;  %v1970_v56 = vmul.f32 %v4751_v53, %v4085_v60  ;;  %v1971_v58 = vmul.f32 %v4064_v49, %v4768_v52  ;;  %v1933_v61 = vmul.f32 %v4026_v23, %v4744_v42  ;;  %v4836_v29 = vsel %vm568_vm4, %v1893_v59, 0.0 }
 0x4ad   : > { %v4794_v0 = vsel %vm568_vm4, 0.0, %v1895_v63  ;;  %3649 = vrot.lane.b32.xlu0 %v4781_v62, %s5479_s26  ;;  %3619 = vrot.lane.b32.xlu1 %v3618_v21, %s5462_s19  ;;  %v1897_v40 = vpop.permute.xlu1 %1896  ;;  %v3678_v39 = vpack.i.bf16 %v1959_v18, %v1958_v17  ;;  %v1930_v21 = vmul.f32 %v4026_v23, %v4741_v54  ;;  %v4845_v24 = vmul.f32 %v4727_v1, %v4101_v16 }
 0x4ae   : > { %v4802_v38 = vsel %vm568_vm4, %v1895_v63, %v1897_v40  ;;  %v1928_v6 = vmul.f32 %v4002_v9, %v4794_v0  ;;  %v3683_v28 = vpack.i.bf16 %v1971_v58, %v1970_v56  ;;  %v4849_v30 = vpack.i.bf16 %v4836_v29, %v4788_v57 }
 0x4af   : > { %v1929_v5 = vmul.f32 %v4006_v11, %v4802_v38  ;;  %v3653_v63 = vpack.i.bf16 %v1933_v61, %v1930_v21  ;;  %v4853_v59 = vmul.f32 %v4093_v7, %v4730_v25  ;;  %v4859_v12 = vpack.i.bf16 %v4794_v0, %v4791_v31 }
 0x4b0   : > { %v3139_v14 = vpack.c.bf16 %v1928_v6, %v1926_v13  ;;  %v4863_v1 = vmul.f32 %v4095_v8, %v4741_v54  ;;  %v4867_v6 = vmul.f32 %v4095_v8, %v4744_v42  ;;  %v4873_v25 = vmul.f32 %v4751_v53, %v4101_v16 }
 0x4b1   : > { %3669 = vrot.lane.b32.xlu0 %v3668_v4, %s5461_s21  ;;  %3624 = vrot.lane.b32.xlu1 %v3623_v41, %s5463_s17  ;;  %v3137_v20 = vpack.c.bf16 %v1929_v5, %v1927_v3  ;;  %v1945_v41 = vmul.f32 %v4042_v35, %v4744_v42  ;;  %v3808_v44 = vpack.i.bf16 %v4853_v59, %v4845_v24  ;;  %v4880_v4 = vsel %vm568_vm4, %v1897_v40, 0.0 }
 0x4b2   : > { %v4877_v10 = vmul.f32 %v4093_v7, %v4768_v52  ;;  %v1942_v3 = vmul.f32 %v4042_v35, %v4741_v54  ;;  %v3823_v5 = vpack.i.bf16 %v4867_v6, %v4863_v1  ;;  %v1937_v53 = vmul.f32 %v4788_v57, %v4036_v32 }
 0x4b3   : > { %3138 = vmatprep.subr.bf16.mxu0 %v3137_v20  ;;  %v1938_v52 = vmul.f32 %v4024_v22, %v4836_v29  ;;  %v1957_v13 = vmul.f32 %v4038_v33, %v4744_v42  ;;  %v4899_v20 = vmul.f32 %v4095_v8, %v4791_v31  ;;  %v4914_v17 = vmul.f32 %v4802_v38, %v4101_v16 }
 0x4b4   : > { %3140 = vmatpush1.bf16.msra.mxu0 %v3139_v14  ;;  %v3813_v40 = vpack.i.bf16 %v4877_v10, %v4873_v25  ;;  %v3658_v36 = vpack.i.bf16 %v1945_v41, %v1942_v3  ;;  %v4903_v14 = vmul.f32 %v4095_v8, %v4794_v0  ;;  %v4918_v18 = vmul.f32 %v4093_v7, %v4880_v4 }
 0x4b5   : > { %3674 = vrot.lane.b32.xlu0 %v3673_v47, %s5462_s19  ;;  %3629 = vrot.lane.b32.xlu1 %v3628_v51, %s5464_s22  ;;  %v1954_v47 = vmul.f32 %v4038_v33, %v4741_v54  ;;  %v1949_v58 = vmul.f32 %v4788_v57, %v4062_v48  ;;  %v1950_v61 = vmul.f32 %v4040_v34, %v4836_v29 }
 0x4b6   : > { %v3838_v51 = vpack.i.bf16 %v4903_v14, %v4899_v20  ;;  %v1961_v41 = vmul.f32 %v4788_v57, %v4068_v50  ;;  %v1962_v3 = vmul.f32 %v4045_v37, %v4836_v29 }
 0x4b7   : > { %v3663_v56 = vpack.i.bf16 %v1957_v13, %v1954_v47  ;;  %v3703_v21 = vpack.i.bf16 %v1950_v61, %v1949_v58  ;;  %v1969_v47 = vmul.f32 %v4056_v45, %v4744_v42  ;;  %v1939_v58 = vmul.f32 %v4026_v23, %v4794_v0 }
 0x4b8   : > { %v1952_v61 = vmul.f32 %v4802_v38, %v4062_v48  ;;  %v1936_v42 = vmul.f32 %v4026_v23, %v4791_v31 }
 0x4b9   : > { %3679 = vrot.lane.b32.xlu0 %v3678_v39, %s5463_s17  ;;  %3639 = vrot.lane.b32.xlu1 %v4755_v27, %s5479_s26  ;;  %v3698_v39 = vpack.i.bf16 %v1938_v52, %v1937_v53  ;;  %v3708_v53 = vpack.i.bf16 %v1962_v3, %v1961_v41  ;;  %v1940_v52 = vmul.f32 %v4802_v38, %v4036_v32 }
 0x4ba   : > { %v3733_v41 = vpack.i.bf16 %v1939_v58, %v1936_v42  ;;  %v1951_v3 = vmul.f32 %v4042_v35, %v4794_v0  ;;  %v1972_v42 = vmul.f32 %v4056_v45, %v4791_v31 }
 0x4bd   : > { %3684 = vrot.lane.b32.xlu0 %v3683_v28, %s5464_s22  ;;  %3644 = vrot.lane.b32.xlu1 %v4781_v62, %s5478_s25  ;;  %v3858_v28 = vpack.i.bf16 %v4918_v18, %v4914_v17 }
 0x4c1   : > { %3689 = vrot.lane.b32.xlu0 %v4849_v30, %s5478_s25  ;;  %3654 = vrot.lane.b32.xlu1 %v3653_v63, %s5461_s21  ;;  %v3723_v63 = vpack.i.bf16 %v4880_v4, %v4802_v38 }
 0x4c5   : > { %3694 = vrot.lane.b32.xlu0 %v4849_v30, %s5479_s26  ;;  %3659 = vrot.lane.b32.xlu1 %v3658_v36, %s5462_s19  ;;  %v1941_v36 = vmul.f32 %v4024_v22, %v4880_v4 }
 0x4c7   : > { %v3748_v13 = vpack.i.bf16 %v1941_v36, %v1940_v52  ;;  %v1963_v36 = vmul.f32 %v4038_v33, %v4794_v0 }
 0x4c9   : > { %3699 = vrot.lane.b32.xlu0 %v3698_v39, %s5461_s21  ;;  %3664 = vrot.lane.b32.xlu1 %v3663_v56, %s5463_s17  ;;  %v1966_v39 = vmul.f32 %v4056_v45, %v4741_v54 }
 0x4cb   : > { %v3753_v56 = vpack.i.bf16 %v1969_v47, %v1966_v39  ;;  %v1973_v39 = vmul.f32 %v4788_v57, %v4085_v60 }
 0x4cd   : > { %3704 = vrot.lane.b32.xlu0 %v3703_v21, %s5462_s19  ;;  %3724 = vrot.lane.b32.xlu1 %v3723_v63, %s5478_s25  ;;  %v1953_v21 = vmul.f32 %v4040_v34, %v4880_v4 }
 0x4cf   : > { %v3768_v54 = vpack.i.bf16 %v1953_v21, %v1952_v61  ;;  %v1975_v61 = vmul.f32 %v4056_v45, %v4794_v0  ;;  %v1965_v21 = vmul.f32 %v4045_v37, %v4880_v4  ;;  %v1977_v0 = vmul.f32 %v4064_v49, %v4880_v4 }
 0x4d0   : > { %v1986_v4 = vmul.f32 %v4093_v7, %v4836_v29 }
 0x4d1   : > { %3709 = vrot.lane.b32.xlu0 %v3708_v53, %s5463_s17  ;;  %3729 = vrot.lane.b32.xlu1 %v3723_v63, %s5479_s26  ;;  %v1948_v53 = vmul.f32 %v4042_v35, %v4791_v31 }
 0x4d3   : > { %v3738_v52 = vpack.i.bf16 %v1951_v3, %v1948_v53  ;;  %v2816_v3 = vld [vmem:[%s5428_s12 + $0x8] sm:$0xff] }
 0x4d5   : > { %3714 = vrot.lane.b32.xlu0 %v4859_v12, %s5478_s25  ;;  %3749 = vrot.lane.b32.xlu1 %v3748_v13, %s5461_s21  ;;  %v1960_v13 = vmul.f32 %v4038_v33, %v4791_v31 }
 0x4d7   : > { %v3743_v47 = vpack.i.bf16 %v1963_v36, %v1960_v13  ;;  %v2786_v36 = vld [vmem:[%s5427_s11 + $0x18] sm:$0xff] }
 0x4d9   : > { %3719 = vrot.lane.b32.xlu0 %v4859_v12, %s5479_s26  ;;  %3754 = vrot.lane.b32.xlu1 %v3753_v56, %s5464_s22  ;;  %v1974_v56 = vmul.f32 %v4064_v49, %v4836_v29 }
 0x4db   : > { %v3758_v58 = vpack.i.bf16 %v1974_v56, %v1973_v39 }
 0x4dd   : > { %3734 = vrot.lane.b32.xlu0 %v3733_v41, %s5461_s21  ;;  %3769 = vrot.lane.b32.xlu1 %v3768_v54, %s5462_s19  ;;  %v3763_v41 = vpack.i.bf16 %v1975_v61, %v1972_v42  ;;  %v2785_v61 = vld [vmem:[%s5427_s11 + $0x10] sm:$0xff] }
 0x4e1   : > { %3739 = vrot.lane.b32.xlu0 %v3738_v52, %s5462_s19  ;;  %3774 = vrot.lane.b32.xlu1 %v4734_v26, %s5465_s23  ;;  %v1964_v26 = vmul.f32 %v4802_v38, %v4068_v50 }
 0x4e3   : > { %v3803_v54 = vpack.i.bf16 %v1965_v21, %v1964_v26  ;;  %v2818_v26 = vld [vmem:[%s5428_s12 + $0x18] sm:$0xff] }
 0x4e5   : > { %3744 = vrot.lane.b32.xlu0 %v3743_v47, %s5463_s17  ;;  %3784 = vrot.lane.b32.xlu1 %v4755_v27, %s5465_s23  ;;  %v1976_v27 = vmul.f32 %v4802_v38, %v4085_v60  ;;  %v1985_v38 = vmul.f32 %v4788_v57, %v4101_v16  ;;  %v1863_v57 = vld [vmem:[%s5425_s9 + $0x8] sm:$0xff] }
 0x4e6   : > { %2454 = vmatprep.mubr.f32.mxu0 %v1863_v57 }
 0x4e7   : > { %v3818_v31 = vpack.i.bf16 %v1977_v0, %v1976_v27 }
 0x4e9   : > { %3759 = vrot.lane.b32.xlu0 %v3758_v58, %s5464_s22  ;;  %3794 = vrot.lane.b32.xlu1 %v3723_v63, %s5465_s23  ;;  %v5009_v63 = vpop.permute.xlu1 %555 }
 0x4ea   : > { %v1747_v24 = vsel %vm568_vm4, %v5009_v63, 0.0  ;;  %v1754_v6 = vmul.f32 %v4062_v48, %v5009_v63  ;;  %v1760_v10 = vmul.f32 %v4085_v60, %v5009_v63  ;;  %v1763_v14 = vmul.f32 %v4101_v16, %v5009_v63  ;;  %v2784_v16 = vld [vmem:[%s5427_s11 + $0x8] sm:$0xff] }
 0x4eb   : > { %v3828_v29 = vpack.i.bf16 %v1747_v24, %v5009_v63  ;;  %v1752_v59 = vmul.f32 %v4024_v22, %v1747_v24  ;;  %v1758_v25 = vmul.f32 %v4045_v37, %v1747_v24 }
 0x4ed   : > { %3764 = vrot.lane.b32.xlu0 %v3763_v41, %s5464_s22  ;;  %3804 = vrot.lane.b32.xlu1 %v3803_v54, %s5463_s17 }
 0x4f1   : > { %3779 = vrot.lane.b32.xlu0 %v4781_v62, %s5465_s23  ;;  %3809 = vrot.lane.b32.xlu1 %v3808_v44, %s5466_s27  ;;  %v3833_v62 = vpack.i.bf16 %v1986_v4, %v1985_v38  ;;  %v1755_v44 = vmul.f32 %v4040_v34, %v1747_v24  ;;  %v1757_v34 = vmul.f32 %v4068_v50, %v5009_v63  ;;  %v2817_v38 = vld [vmem:[%s5428_s12 + $0x10] sm:$0xff] }
 0x4f3   : > { %v3848_v22 = vpack.i.bf16 %v1755_v44, %v1754_v6 }
 0x4f5   : > { %3789 = vrot.lane.b32.xlu0 %v4849_v30, %s5465_s23  ;;  %3819 = vrot.lane.b32.xlu1 %v3818_v31, %s5464_s22  ;;  %v1751_v30 = vmul.f32 %v4036_v32, %v5009_v63 }
 0x4f7   : > { %v3843_v1 = vpack.i.bf16 %v1752_v59, %v1751_v30  ;;  %v2856_v59 = vld [vmem:[%s5430_s14] sm:$0x7] }
 0x4f9   : > { %3799 = vrot.lane.b32.xlu0 %v4859_v12, %s5465_s23  ;;  %3824 = vrot.lane.b32.xlu1 %v3823_v5, %s5466_s27  ;;  %v5033_v12 = vsel %vm568_vm4, 0.0, %v5009_v63  ;;  %vm5480_vm4 = vmmov %vm5474_vm5 }
 0x4fa   : > { %v1750_v32 = vmul.f32 %v4026_v23, %v5033_v12  ;;  %v1753_v48 = vmul.f32 %v4042_v35, %v5033_v12  ;;  %v1761_v23 = vmul.f32 %v4064_v49, %v1747_v24  ;;  %v3863_v35 = vpack.i.bf16 %v1758_v25, %v1757_v34 }
 0x4fb   : > { %v1756_v49 = vmul.f32 %v4038_v33, %v5033_v12  ;;  %v1759_v60 = vmul.f32 %v4056_v45, %v5033_v12  ;;  %v1762_v45 = vmul.f32 %v4095_v8, %v5033_v12  ;;  %v2783_v8 = vld [vmem:[%s5427_s11] sm:$0xff] }
 0x4fc   : > { %v3868_v5 = vpack.i.bf16 %v1761_v23, %v1760_v10 }
 0x4fd   : > { %3814 = vrot.lane.b32.xlu0 %v3813_v40, %s5466_s27  ;;  %3834 = vrot.lane.b32.xlu1 %v3833_v62, %s5466_s27 }
 0x501   : > { %3829 = vrot.lane.b32.xlu0 %v3828_v29, %s5478_s25  ;;  %1767 = vrot.lane.b32.xlu1 %v5033_v12, %s5478_s25  ;;  %s511_s25 = scalar_lea.vmem %s5431_s15, %s3993_s20 }
 0x505   : > { %3839 = vrot.lane.b32.xlu0 %v3838_v51, %s5466_s27  ;;  %3844 = vrot.lane.b32.xlu1 %v3843_v1, %s5461_s21 }
 0x509   : > { %3849 = vrot.lane.b32.xlu0 %v3848_v22, %s5462_s19  ;;  %1780 = vrot.lane.b32.xlu1 %v1750_v32, %s5461_s21 }
 0x50d   : > { %1793 = vrot.lane.b32.xlu0 %v1753_v48, %s5462_s19  ;;  %3854 = vrot.lane.b32.xlu1 %v3828_v29, %s5479_s26 }
 0x511   : > { %3859 = vrot.lane.b32.xlu0 %v3858_v28, %s5466_s27  ;;  %1803 = vrot.lane.b32.xlu1 %v5033_v12, %s5479_s26  ;;  %v1764_v28 = vmul.f32 %v4093_v7, %v1747_v24  ;;  %v2815_v7 = vld [vmem:[%s5428_s12] sm:$0xff] }
 0x515   : > { %3864 = vrot.lane.b32.xlu0 %v3863_v35, %s5463_s17  ;;  %3869 = vrot.lane.b32.xlu1 %v3868_v5, %s5464_s22 }
 0x517   : > { %v3605_v37 = vpop.permute.xlu0 %3604  ;;  %v5068_v50 = vpop.permute.xlu1 %3609 }
 0x518   : > { %v3607_v39 = vunpack.i.h.bf16 %v3605_v37  ;;  %v3606_v56 = vunpack.i.l.bf16 %v3605_v37 }
 0x519   : > { %1816 = vrot.lane.b32.xlu0 %v1756_v49, %s5463_s17  ;;  %1829 = vrot.lane.b32.xlu1 %v1759_v60, %s5464_s22 }
 0x51a   : > { %v2023_v4 = vsel %vm652_vm12, %v3606_v56, %v3607_v39 }
 0x51b   : > { %v3635_v40 = vpop.permute.xlu0 %3634  ;;  %v5076_v20 = vpop.permute.xlu1 %3614 }
 0x51c   : > { %v3636_v58 = vunpack.i.l.bf16 %v3635_v40  ;;  %v3637_v41 = vunpack.i.h.bf16 %v3635_v40 }
 0x51d   : > { %3874 = vrot.lane.b32.xlu0 %v3828_v29, %s5465_s23  ;;  %1854 = vrot.lane.b32.xlu1 %v1763_v14, %s5466_s27 }
 0x51e   : > { %v2022_v0 = vsel %vm652_vm12, %v3636_v58, %v3606_v56 }
 0x51f   : > { %v5082_v51 = vpop.permute.xlu0 %3649  ;;  %v5084_v33 = vpop.permute.xlu1 %3619 }
 0x521   : > { %1839 = vrot.lane.b32.xlu0 %v5033_v12, %s5465_s23  ;;  %1852 = vrot.lane.b32.xlu1 %v1762_v45, %s5466_s27  ;;  %v3617_v45 = vunpack.i.h.bf16 %v5076_v20 }
 0x523   : > { %v5094_v17 = vpop.permute.xlu0 %3669  ;;  %v5096_v18 = vpop.permute.xlu1 %3624 }
 0x524   : > { %v3672_v40 = vunpack.i.h.bf16 %v5094_v17  ;;  %v3671_v14 = vunpack.i.l.bf16 %v5094_v17 }
 0x525   : > { %1856 = vrot.lane.b32.xlu0 %v1764_v28, %s5466_s27  ;;  %2794 = vperm.xlu1 %3361, %v2784_v16   ;;  %v3616_v16 = vunpack.i.l.bf16 %v5076_v20 }
 0x527   : > { %v5106_v53 = vpop.permute.xlu0 %3674  ;;  %v5108_v52 = vpop.permute.xlu1 %3629 }
 0x528   : > { %v3676_v20 = vunpack.i.l.bf16 %v5106_v53 }
 0x529   : > { %2789 = vperm.xlu0 %3362, %v2783_v8   ;;  %2826 = vperm.xlu1 %3361, %v2816_v3  }
 0x52b   : > { %v5116_v13 = vpop.permute.xlu0 %3679  ;;  %v5118_v47 = vpop.permute.xlu1 %3639 }
 0x52d   : > { %2821 = vperm.xlu0 %3362, %v2815_v7   ;;  %2804 = vperm.xlu1 %3361, %v2786_v36  }
 0x52f   : > { %v5126_v21 = vpop.permute.xlu0 %3684  ;;  %v3645_v42 = vpop.permute.xlu1 %3644 }
 0x530   : > { %v3647_v54 = vunpack.i.h.bf16 %v3645_v42  ;;  %v3646_v27 = vunpack.i.l.bf16 %v3645_v42 }
 0x531   : > { %2799 = vperm.xlu0 %3362, %v2785_v61   ;;  %2836 = vperm.xlu1 %3361, %v2818_v26   ;;  %v2077_v61 = vsel %vm669_vm14, %v3671_v14, %v3672_v40  ;;  %v3677_v26 = vunpack.i.h.bf16 %v5106_v53 }
 0x532   : > { %v2024_v31 = vsel %vm652_vm12, %v3637_v41, %v3646_v27  ;;  %v2025_v62 = vsel %vm652_vm12, %v3646_v27, %v3647_v54  ;;  %v2075_v41 = vsel %vm669_vm14, %v3616_v16, %v3617_v45 }
 0x533   : > { %v3143_v24 = vpack.c.bf16 %v2024_v31, %v2022_v0  ;;  %v3690_v57 = vpop.permute.xlu0 %3689  ;;  %v3655_v29 = vpop.permute.xlu1 %3654  ;;  %v3141_v30 = vpack.c.bf16 %v2025_v62, %v2023_v4 }
 0x534   : > { %v3692_v32 = vunpack.i.h.bf16 %v3690_v57  ;;  %v3691_v48 = vunpack.i.l.bf16 %v3690_v57  ;;  %v3657_v3 = vunpack.i.h.bf16 %v3655_v29  ;;  %v3656_v7 = vunpack.i.l.bf16 %v3655_v29 }
 0x535   : > { %2831 = vperm.xlu0 %3362, %v2817_v38   ;;  %3142 = vmatprep.subr.bf16.mxu0 %v3141_v30  ;;  %v3622_v29 = vunpack.i.h.bf16 %v5084_v33  ;;  %v3621_v30 = vunpack.i.l.bf16 %v5084_v33  ;;  %v3651_v33 = vunpack.i.l.bf16 %v5082_v51 }
 0x536   : > { %3144 = vmatpush1.bf16.msra.mxu0 %v3143_v24  ;;  %v2027_v35 = vsel %vm652_vm12, %v3691_v48, %v3692_v32  ;;  %v2076_v4 = vsel %vm669_vm14, %v3657_v3, %v3671_v14  ;;  %v2074_v62 = vsel %vm669_vm14, %v3656_v7, %v3616_v16  ;;  %v3149_v24 = vpack.c.bf16 %v2077_v61, %v2075_v41 }
 0x537   : > { %v5138_v1 = vpop.permute.xlu0 %3694  ;;  %v5140_v6 = vpop.permute.xlu1 %3659  ;;  %v3151_v53 = vpack.c.bf16 %v2076_v4, %v2074_v62  ;;  %v3641_v4 = vunpack.i.l.bf16 %v5118_v47 }
 0x539   : > { %2859 = vperm.xlu0 %3362, %v2856_v59   ;;  %v3662_v59 = vunpack.i.h.bf16 %v5140_v6 }
 0x53b   : > { %v3700_v44 = vpop.permute.xlu0 %3699  ;;  %v5142_v22 = vpop.permute.xlu1 %3664 }
 0x53c   : > { %v3702_v54 = vunpack.i.h.bf16 %v3700_v44  ;;  %v3701_v27 = vunpack.i.l.bf16 %v3700_v44 }
 0x53f   : > { %v5144_v34 = vpop.permute.xlu0 %3704  ;;  %v3725_v25 = vpop.permute.xlu1 %3724 }
 0x540   : > { %v3727_v10 = vunpack.i.h.bf16 %v3725_v25  ;;  %v3726_v23 = vunpack.i.l.bf16 %v3725_v25  ;;  %v2129_v25 = vsel %vm686_vm10, %v3676_v20, %v3677_v26 }
 0x542   : > { %v2029_v5 = vsel %vm652_vm12, %v3726_v23, %v3727_v10  ;;  %v3661_v10 = vunpack.i.l.bf16 %v5140_v6  ;;  %v3706_v6 = vunpack.i.l.bf16 %v5144_v34 }
 0x543   : > { %v5148_v37 = vpop.permute.xlu0 %3709  ;;  %v5150_v49 = vpop.permute.xlu1 %3729  ;;  %v3145_v60 = vpack.c.bf16 %v2029_v5, %v2027_v35 }
 0x545   : > { %3146 = vmatprep.subr.bf16.mxu0 %v3145_v60  ;;  %v3652_v60 = vunpack.i.h.bf16 %v5082_v51  ;;  %v2126_v51 = vsel %vm686_vm10, %v3661_v10, %v3621_v30 }
 0x547   : > { %v3715_v28 = vpop.permute.xlu0 %3714  ;;  %v3750_v8 = vpop.permute.xlu1 %3749 }
 0x548   : > { %v3717_v36 = vunpack.i.h.bf16 %v3715_v28  ;;  %v3716_v39 = vunpack.i.l.bf16 %v3715_v28  ;;  %v3752_v56 = vunpack.i.h.bf16 %v3750_v8  ;;  %v3751_v58 = vunpack.i.l.bf16 %v3750_v8 }
 0x549   : > { %v2127_v28 = vsel %vm686_vm10, %v3621_v30, %v3622_v29  ;;  %v3707_v8 = vunpack.i.h.bf16 %v5144_v34  ;;  %v3642_v34 = vunpack.i.h.bf16 %v5118_v47  ;;  %v3731_v29 = vunpack.i.l.bf16 %v5150_v49 }
 0x54a   : > { %v2026_v42 = vsel %vm652_vm12, %v3716_v39, %v3691_v48  ;;  %v2028_v17 = vsel %vm652_vm12, %v3717_v36, %v3726_v23  ;;  %v2081_v57 = vsel %vm669_vm14, %v3751_v58, %v3752_v56  ;;  %v2079_v48 = vsel %vm669_vm14, %v3701_v27, %v3702_v54 }
 0x54b   : > { %v3147_v0 = vpack.c.bf16 %v2028_v17, %v2026_v42  ;;  %v5162_v31 = vpop.permute.xlu0 %3719  ;;  %v5164_v38 = vpop.permute.xlu1 %3754  ;;  %v3153_v5 = vpack.c.bf16 %v2081_v57, %v2079_v48  ;;  %v3157_v39 = vpack.c.bf16 %v2129_v25, %v2127_v28  ;;  %v2128_v56 = vsel %vm686_vm10, %v3662_v59, %v3676_v20 }
 0x54c   : > { %v3612_v42 = vunpack.i.h.bf16 %v5068_v50  ;;  %v3611_v17 = vunpack.i.l.bf16 %v5068_v50  ;;  %v3159_v41 = vpack.c.bf16 %v2128_v56, %v2126_v51  ;;  %v2131_v20 = vsel %vm686_vm10, %v3706_v6, %v3707_v8 }
 0x54d   : > { %3148 = vmatpush1.bf16.msra.mxu0 %v3147_v0  ;;  %v2169_v0 = vsel %vm700_vm13, %v3651_v33, %v3652_v60  ;;  %v3732_v50 = vunpack.i.h.bf16 %v5150_v49  ;;  %v3696_v59 = vunpack.i.l.bf16 %v5138_v1  ;;  %v2168_v25 = vsel %vm700_vm13, %v3642_v34, %v3651_v33 }
 0x54e   : > { %3150 = vmatprep.subr.bf16.mxu0 %v3149_v24  ;;  %v2167_v30 = vsel %vm700_vm13, %v3611_v17, %v3612_v42  ;;  %v2166_v10 = vsel %vm700_vm13, %v3641_v4, %v3611_v17  ;;  %v3722_v49 = vunpack.i.h.bf16 %v5162_v31  ;;  %v3627_v60 = vunpack.i.h.bf16 %v5096_v18 }
 0x54f   : > { %v3735_v44 = vpop.permute.xlu0 %3734  ;;  %v3770_v32 = vpop.permute.xlu1 %3769  ;;  %v3165_v48 = vpack.c.bf16 %v2169_v0, %v2167_v30  ;;  %v3667_v33 = vunpack.i.h.bf16 %v5142_v22  ;;  %v3666_v28 = vunpack.i.l.bf16 %v5142_v22  ;;  %v3686_v51 = vunpack.i.l.bf16 %v5126_v21 }
 0x550   : > { %v3737_v23 = vunpack.i.h.bf16 %v3735_v44  ;;  %v3736_v35 = vunpack.i.l.bf16 %v3735_v44  ;;  %v3772_v40 = vunpack.i.h.bf16 %v3770_v32  ;;  %v3771_v14 = vunpack.i.l.bf16 %v3770_v32 }
 0x551   : > { %3152 = vmatpush1.bf16.msra.mxu0 %v3151_v53  ;;  %v3697_v53 = vunpack.i.h.bf16 %v5138_v1  ;;  %v2173_v1 = vsel %vm700_vm13, %v3731_v29, %v3732_v50  ;;  %v2172_v8 = vsel %vm700_vm13, %v3722_v49, %v3731_v29  ;;  %v3711_v22 = vunpack.i.l.bf16 %v5148_v37 }
 0x552   : > { %v2078_v45 = vsel %vm669_vm14, %v3736_v35, %v3701_v27  ;;  %v2080_v16 = vsel %vm669_vm14, %v3737_v23, %v3751_v58  ;;  %3154 = vmatprep.subr.bf16.mxu0 %v3153_v5  ;;  %v2133_v58 = vsel %vm686_vm10, %v3771_v14, %v3772_v40  ;;  %v3721_v23 = vunpack.i.l.bf16 %v5162_v31 }
 0x553   : > { %v3155_v3 = vpack.c.bf16 %v2080_v16, %v2078_v45  ;;  %v3740_v7 = vpop.permute.xlu0 %3739  ;;  %v5182_v36 = vpop.permute.xlu1 %3774  ;;  %v3161_v57 = vpack.c.bf16 %v2133_v58, %v2131_v20  ;;  %v3682_v35 = vunpack.i.h.bf16 %v5116_v13  ;;  %v3681_v5 = vunpack.i.l.bf16 %v5116_v13 }
 0x554   : > { %v3742_v61 = vunpack.i.h.bf16 %v3740_v7  ;;  %v3741_v26 = vunpack.i.l.bf16 %v3740_v7  ;;  %v3626_v40 = vunpack.i.l.bf16 %v5096_v18  ;;  %v2171_v31 = vsel %vm700_vm13, %v3696_v59, %v3697_v53 }
 0x555   : > { %3156 = vmatpush1.bf16.msra.mxu0 %v3155_v3  ;;  %v2170_v13 = vsel %vm700_vm13, %v3721_v23, %v3696_v59  ;;  %v2221_v18 = vsel %vm717_vm0, %v3681_v5, %v3682_v35  ;;  %v2220_v17 = vsel %vm717_vm0, %v3667_v33, %v3681_v5  ;;  %v3632_v0 = vunpack.i.h.bf16 %v5108_v52 }
 0x556   : > { %3158 = vmatprep.subr.bf16.mxu0 %v3157_v39  ;;  %v2130_v62 = vsel %vm686_vm10, %v3741_v26, %v3706_v6  ;;  %v2132_v24 = vsel %vm686_vm10, %v3742_v61, %v3771_v14  ;;  %v3167_v14 = vpack.c.bf16 %v2168_v25, %v2166_v10  ;;  %v3169_v6 = vpack.c.bf16 %v2173_v1, %v2171_v31 }
 0x557   : > { %v5190_v54 = vpop.permute.xlu0 %3744  ;;  %v5192_v27 = vpop.permute.xlu1 %3784  ;;  %v3163_v44 = vpack.c.bf16 %v2132_v24, %v2130_v62  ;;  %v3687_v39 = vunpack.i.h.bf16 %v5126_v21  ;;  %v2219_v56 = vsel %vm717_vm0, %v3626_v40, %v3627_v60  ;;  %v3712_v61 = vunpack.i.h.bf16 %v5148_v37 }
 0x558   : > { %v3171_v26 = vpack.c.bf16 %v2172_v8, %v2170_v13  ;;  %v2218_v34 = vsel %vm717_vm0, %v3666_v28, %v3626_v40  ;;  %v3631_v21 = vunpack.i.l.bf16 %v5108_v52  ;;  %v3747_v4 = vunpack.i.h.bf16 %v5190_v54 }
 0x559   : > { %3160 = vmatpush1.bf16.msra.mxu0 %v3159_v41  ;;  %v3173_v41 = vpack.c.bf16 %v2221_v18, %v2219_v56  ;;  %v3746_v37 = vunpack.i.l.bf16 %v5190_v54  ;;  %v3175_v62 = vpack.c.bf16 %v2220_v17, %v2218_v34  ;;  %v2223_v50 = vsel %vm717_vm0, %v3711_v22, %v3712_v61 }
 0x55a   : > { %3162 = vmatprep.subr.bf16.mxu0 %v3161_v57  ;;  %v2273_v29 = vsel %vm734_vm11, %v3686_v51, %v3687_v39  ;;  %v3757_v30 = vunpack.i.h.bf16 %v5164_v38  ;;  %v3756_v53 = vunpack.i.l.bf16 %v5164_v38  ;;  %v2271_v25 = vsel %vm734_vm11, %v3631_v21, %v3632_v0 }
 0x55b   : > { %v5204_v32 = vpop.permute.xlu0 %3759  ;;  %v5206_v47 = vpop.permute.xlu1 %3794  ;;  %v2222_v54 = vsel %vm717_vm0, %v3746_v37, %v3711_v22  ;;  %v3181_v38 = vpack.c.bf16 %v2273_v29, %v2271_v25  ;;  %v1748_v39 = vmul.f32 %v4002_v9, %v5033_v12 }
 0x55c   : > { %v3762_v10 = vunpack.i.h.bf16 %v5204_v32  ;;  %v3761_v49 = vunpack.i.l.bf16 %v5204_v32  ;;  %v2272_v1 = vsel %vm734_vm11, %v3757_v30, %v3686_v51  ;;  %v2270_v60 = vsel %vm734_vm11, %v3756_v53, %v3631_v21 }
 0x55d   : > { %3164 = vmatpush1.bf16.msra.mxu0 %v3163_v44  ;;  %v3776_v32 = vunpack.i.l.bf16 %v5182_v36  ;;  %v3183_v13 = vpack.c.bf16 %v2272_v1, %v2270_v60  ;;  %v3786_v51 = vunpack.i.l.bf16 %v5192_v27  ;;  %v3797_v22 = vunpack.i.h.bf16 %v5206_v47 }
 0x55e   : > { %3166 = vmatprep.subr.bf16.mxu0 %v3165_v48 }
 0x55f   : > { %v5218_v45 = vpop.permute.xlu0 %3764  ;;  %v3805_v16 = vpop.permute.xlu1 %3804 }
 0x560   : > { %v3807_v3 = vunpack.i.h.bf16 %v3805_v16  ;;  %v3806_v7 = vunpack.i.l.bf16 %v3805_v16  ;;  %v3777_v16 = vunpack.i.h.bf16 %v5182_v36  ;;  %v3767_v31 = vunpack.i.h.bf16 %v5218_v45 }
 0x561   : > { %3168 = vmatpush1.bf16.msra.mxu0 %v3167_v14  ;;  %v3766_v28 = vunpack.i.l.bf16 %v5218_v45  ;;  %v3787_v36 = vunpack.i.h.bf16 %v5192_v27 }
 0x562   : > { %3170 = vmatprep.subr.bf16.mxu0 %v3169_v6  ;;  %v2225_v20 = vsel %vm717_vm0, %v3806_v7, %v3807_v3  ;;  %v2224_v59 = vsel %vm717_vm0, %v3747_v4, %v3806_v7  ;;  %v2275_v3 = vsel %vm734_vm11, %v3761_v49, %v3762_v10  ;;  %v2311_v9 = vsel %vm748_vm2, %v3776_v32, %v3777_v16 }
 0x563   : > { %v5230_v58 = vpop.permute.xlu0 %3779  ;;  %v5232_v42 = vpop.permute.xlu1 %3809  ;;  %v3177_v52 = vpack.c.bf16 %v2225_v20, %v2223_v50  ;;  %v3179_v23 = vpack.c.bf16 %v2224_v59, %v2222_v54  ;;  %v1749_v20 = vmul.f32 %v4006_v11, %v5009_v63 }
 0x564   : > { %v3782_v40 = vunpack.i.h.bf16 %v5230_v58  ;;  %v3781_v14 = vunpack.i.l.bf16 %v5230_v58  ;;  %v2274_v58 = vsel %vm734_vm11, %v3766_v28, %v3761_v49  ;;  %v3812_v50 = vunpack.i.h.bf16 %v5232_v42  ;;  %v1862_v28 = vld [vmem:[%s5425_s9] sm:$0xff] }
 0x565   : > { %3172 = vmatpush1.bf16.msra.mxu0 %v3171_v26  ;;  %v3796_v26 = vunpack.i.l.bf16 %v5206_v47  ;;  %v2310_v47 = vsel %vm748_vm2, %v3786_v51, %v3776_v32  ;;  %v3811_v53 = vunpack.i.l.bf16 %v5232_v42 }
 0x566   : > { %3174 = vmatprep.subr.bf16.mxu0 %v3173_v41  ;;  %v2313_v56 = vsel %vm748_vm2, %v3781_v14, %v3782_v40  ;;  %v2312_v12 = vsel %vm748_vm2, %v3787_v36, %v3781_v14 }
 0x567   : > { %v5241_v24 = vpop.permute.xlu0 %3789  ;;  %v3820_v57 = vpop.permute.xlu1 %3819  ;;  %v3189_v27 = vpack.c.bf16 %v2313_v56, %v2311_v9  ;;  %v2317_v11 = vsel %vm748_vm2, %v3796_v26, %v3797_v22  ;;  %v3191_v63 = vpack.c.bf16 %v2312_v12, %v2310_v47  ;;  %v2363_v14 = vsel %vm762_vm6, %v3811_v53, %v3812_v50  ;;  %v1866_v56 = vld [vmem:[%s5425_s9 + $0x20] sm:$0xff]  ;;  %v1869_v9 = vld [vmem:[%s5425_s9 + $0x38] sm:$0xff] }
 0x568   : > { %v3822_v44 = vunpack.i.h.bf16 %v3820_v57  ;;  %v3821_v48 = vunpack.i.l.bf16 %v3820_v57  ;;  %v3792_v45 = vunpack.i.h.bf16 %v5241_v24  ;;  %v3791_v61 = vunpack.i.l.bf16 %v5241_v24 }
 0x569   : > { %3176 = vmatpush1.bf16.msra.mxu0 %v3175_v62 }
 0x56a   : > { %3178 = vmatprep.subr.bf16.mxu0 %v3177_v52  ;;  %v2277_v33 = vsel %vm734_vm11, %v3821_v48, %v3822_v44  ;;  %v2276_v7 = vsel %vm734_vm11, %v3767_v31, %v3821_v48  ;;  %v2315_v57 = vsel %vm748_vm2, %v3791_v61, %v3792_v45 }
 0x56b   : > { %v3800_v35 = vpop.permute.xlu0 %3799  ;;  %v5252_v5 = vpop.permute.xlu1 %3824  ;;  %v3185_v18 = vpack.c.bf16 %v2277_v33, %v2275_v3  ;;  %v3187_v17 = vpack.c.bf16 %v2276_v7, %v2274_v58  ;;  %v3193_v10 = vpack.c.bf16 %v2317_v11, %v2315_v57  ;;  %v1865_v58 = vld [vmem:[%s5425_s9 + $0x18] sm:$0xff] }
 0x56c   : > { %v3802_v0 = vunpack.i.h.bf16 %v3800_v35  ;;  %v3801_v21 = vunpack.i.l.bf16 %v3800_v35  ;;  %v3826_v35 = vunpack.i.l.bf16 %v5252_v5 }
 0x56d   : > { %3180 = vmatpush1.bf16.msra.mxu0 %v3179_v23  ;;  %v3827_v23 = vunpack.i.h.bf16 %v5252_v5 }
 0x56e   : > { %3182 = vmatprep.subr.bf16.mxu0 %v3181_v38  ;;  %v2314_v54 = vsel %vm748_vm2, %v3801_v21, %v3791_v61  ;;  %v2316_v25 = vsel %vm748_vm2, %v3802_v0, %v3796_v26  ;;  %v2362_v5 = vsel %vm762_vm6, %v3826_v35, %v3811_v53 }
 0x56f   : > { %v3815_v8 = vpop.permute.xlu0 %3814  ;;  %v5263_v6 = vpop.permute.xlu1 %3834  ;;  %v3195_v42 = vpack.c.bf16 %v2316_v25, %v2314_v54 }
 0x570   : > { %v3817_v62 = vunpack.i.h.bf16 %v3815_v8  ;;  %v3816_v24 = vunpack.i.l.bf16 %v3815_v8  ;;  %v3837_v45 = vunpack.i.h.bf16 %v5263_v6  ;;  %v3836_v61 = vunpack.i.l.bf16 %v5263_v6 }
 0x571   : > { %3184 = vmatpush1.bf16.msra.mxu0 %v3183_v13 }
 0x572   : > { %3186 = vmatprep.subr.bf16.mxu0 %v3185_v18  ;;  %v2365_v49 = vsel %vm762_vm6, %v3816_v24, %v3817_v62  ;;  %v2364_v33 = vsel %vm762_vm6, %v3827_v23, %v3816_v24  ;;  %v2367_v0 = vsel %vm762_vm6, %v3836_v61, %v3837_v45  ;;  %v1872_v62 = vld [vmem:[%s5425_s9 + $0x50] sm:$0xff] }
 0x573   : > { %v3830_v34 = vpop.permute.xlu0 %3829  ;;  %v1768_v41 = vpop.permute.xlu1 %1767  ;;  %v3197_v31 = vpack.c.bf16 %v2365_v49, %v2363_v14  ;;  %v3199_v3 = vpack.c.bf16 %v2364_v33, %v2362_v5  ;;  %v1864_v49 = vld [vmem:[%s5425_s9 + $0x10] sm:$0xff] }
 0x574   : > { %v3832_v4 = vunpack.i.h.bf16 %v3830_v34  ;;  %v3831_v37 = vunpack.i.l.bf16 %v3830_v34 }
 0x575   : > { %3188 = vmatpush1.bf16.msra.mxu0 %v3187_v17 }
 0x576   : > { %v1773_v29 = vsel %vm652_vm12, %v1768_v41, %v3831_v37  ;;  %3190 = vmatprep.subr.bf16.mxu0 %v3189_v27  ;;  %v1774_v30 = vsel %vm652_vm12, %v3831_v37, %v3832_v4  ;;  %vm2568_vm12 = vcmask 588800  }
 0x577   : > { %v3207_v59 = vpack.c.bf16 %v1773_v29, %v1748_v39  ;;  %v3840_v52 = vpop.permute.xlu0 %3839  ;;  %v3845_v44 = vpop.permute.xlu1 %3844  ;;  %v3205_v48 = vpack.c.bf16 %v1774_v30, %v1749_v20  ;;  %v1868_v20 = vld [vmem:[%s5425_s9 + $0x30] sm:$0xff] }
 0x578   : > { %v3847_v38 = vunpack.i.h.bf16 %v3845_v44  ;;  %v3846_v1 = vunpack.i.l.bf16 %v3845_v44  ;;  %v3841_v22 = vunpack.i.l.bf16 %v3840_v52  ;;  %v3842_v34 = vunpack.i.h.bf16 %v3840_v52 }
 0x579   : > { %3192 = vmatpush1.bf16.msra.mxu0 %v3191_v63  ;;  %3206 = vmatprep.subr.bf16.mxu1 %v3205_v48  ;;  %v1871_v63 = vld [vmem:[%s5425_s9 + $0x48] sm:$0xff] }
 0x57a   : > { %3194 = vmatprep.subr.bf16.mxu0 %v3193_v10  ;;  %3208 = vmatpush1.bf16.msra.mxu1 %v3207_v59  ;;  %v1787_v13 = vsel %vm669_vm14, %v3846_v1, %v3847_v38  ;;  %v2366_v6 = vsel %vm762_vm6, %v3841_v22, %v3836_v61 }
 0x57b   : > { %v3850_v60 = vpop.permute.xlu0 %3849  ;;  %v1781_v40 = vpop.permute.xlu1 %1780 }
 0x57c   : > { %v3852_v16 = vunpack.i.h.bf16 %v3850_v60  ;;  %v3851_v32 = vunpack.i.l.bf16 %v3850_v60  ;;  %v1786_v36 = vsel %vm669_vm14, %v1781_v40, %v3846_v1  ;;  %v1867_v60 = vld [vmem:[%s5425_s9 + $0x28] sm:$0xff]  ;;  %vm5484_vm14 = vmmov %vm5480_vm4 }
 0x57d   : > { %3196 = vmatpush1.bf16.msra.mxu0 %v3195_v42 }
 0x57e   : > { %3198 = vmatprep.subr.bf16.mxu0 %v3197_v31  ;;  %v1800_v8 = vsel %vm686_vm10, %v3851_v32, %v3852_v16 }
 0x57f   : > { %v1794_v7 = vpop.permute.xlu0 %1793  ;;  %v3855_v18 = vpop.permute.xlu1 %3854  ;;  %v3209_v39 = vpack.c.bf16 %v1800_v8, %v1787_v13 }
 0x580   : > { %v1799_v51 = vsel %vm686_vm10, %v1794_v7, %v3851_v32  ;;  %2455 = vmatmul.mubr.f32.vlgmr.msra.gmra.mrb[8].mxu0 %v1862_v28  ;;  %v3857_v21 = vunpack.i.h.bf16 %v3855_v18  ;;  %v3856_v4 = vunpack.i.l.bf16 %v3855_v18  ;;  %vm5481_vm10 = vmmov %vm5480_vm4  ;;  %v2670_v7 = vld [vmem:[%s5426_s10] sm:$0xff]  ;;  %v1744_v18 = vld [vmem:[%s5424_s8 + $0x10] sm:$0xff] }
 0x581   : > { %v3211_v26 = vpack.c.bf16 %v1799_v51, %v1786_v36  ;;  %3200 = vmatpush1.bf16.msra.mxu0 %v3199_v3  ;;  %3210 = vmatprep.subr.bf16.mxu1 %v3209_v39  ;;  %v1743_v3 = vld [vmem:[%s5424_s8 + $0x8] sm:$0xff]  ;;  %v2672_v36 = vld [vmem:[%s5426_s10 + $0x10] sm:$0xff]  ;;  %v2673_v51 = vld [vmem:[%s5426_s10 + $0x18] sm:$0xff] }
 0x582   : > { %2460 = vmatprep.mubr.f32.mxu0 %v1866_v56  ;;  %v1810_v53 = vsel %vm700_vm13, %v3856_v4, %v3857_v21  ;;  %v2671_v39 = vld [vmem:[%s5426_s10 + $0x8] sm:$0xff]  ;;  %v1745_v56 = vld [vmem:[%s5424_s8 + $0x18] sm:$0xff] }
 0x583   : > { %v3860_v12 = vpop.permute.xlu0 %3859  ;;  %v1804_v17 = vpop.permute.xlu1 %1803  ;;  %3212 = vmatpush1.bf16.msra.mxu1 %v3211_v26 }
 0x584   : > { %v3862_v41 = vunpack.i.h.bf16 %v3860_v12  ;;  %v3861_v27 = vunpack.i.l.bf16 %v3860_v12  ;;  %2461 = vmatmul.mubr.f32.gmra.mrb[10].mxu0 %v1865_v58  ;;  %v1809_v54 = vsel %vm700_vm13, %v1804_v17, %v3856_v4  ;;  %vm5483_vm13 = vmmov %vm5480_vm4 }
 0x585   : > { %2466 = vmatprep.mubr.f32.mxu0 %v1869_v9 }
 0x586   : > { %v2368_v37 = vsel %vm762_vm6, %v3842_v34, %v3861_v27  ;;  %v2369_v47 = vsel %vm762_vm6, %v3861_v27, %v3862_v41 }
 0x587   : > { %v3203_v24 = vpack.c.bf16 %v2368_v37, %v2366_v6  ;;  %v3865_v57 = vpop.permute.xlu0 %3864  ;;  %v3870_v50 = vpop.permute.xlu1 %3869  ;;  %v3201_v29 = vpack.c.bf16 %v2369_v47, %v2367_v0 }
 0x588   : > { %v3867_v30 = vunpack.i.h.bf16 %v3865_v57  ;;  %v3866_v11 = vunpack.i.l.bf16 %v3865_v57  ;;  %2467 = vmatmul.mubr.f32.gmra.mrb[12].mxu0 %v1868_v20  ;;  %v3872_v23 = vunpack.i.h.bf16 %v3870_v50  ;;  %v3871_v35 = vunpack.i.l.bf16 %v3870_v50 }
 0x589   : > { %3202 = vmatprep.subr.bf16.mxu0 %v3201_v29  ;;  %2472 = vmatprep.mubr.f32.mxu0 %v1872_v62 }
 0x58a   : > { %3204 = vmatpush1.bf16.msra.mxu0 %v3203_v24  ;;  %v1823_v59 = vsel %vm717_vm0, %v3866_v11, %v3867_v30  ;;  %v1836_v40 = vsel %vm734_vm11, %v3871_v35, %v3872_v23 }
 0x58b   : > { %v1817_v52 = vpop.permute.xlu0 %1816  ;;  %v1830_v44 = vpop.permute.xlu1 %1829  ;;  %3222 = vmatprep.subr.bf16.mxu0 %v4169_v46  ;;  %v3213_v48 = vpack.c.bf16 %v1823_v59, %v1810_v53 }
 0x58c   : > { %v1822_v25 = vsel %vm717_vm0, %v1817_v52, %v3866_v11  ;;  %2473 = vmatmul.mubr.f32.gmra.mrb[14].mxu0 %v1871_v63  ;;  %v1835_v32 = vsel %vm734_vm11, %v1830_v44, %v3871_v35  ;;  %vm5482_vm11 = vmmov %vm5480_vm4 }
 0x58d   : > { %v3215_v10 = vpack.c.bf16 %v1822_v25, %v1809_v54  ;;  %3214 = vmatprep.subr.bf16.mxu1 %v3213_v48  ;;  %2543 = vmatprep.mubr.f32.mxu0 %v5472_v43 }
 0x58f   : > { %v3875_v38 = vpop.permute.xlu0 %3874  ;;  %3216 = vmatpush1.bf16.msra.mxu1 %v3215_v10  ;;  %v1855_v42 = vpop.permute.xlu1 %1854 }
 0x590   : > { %v3877_v1 = vunpack.i.h.bf16 %v3875_v38  ;;  %v3876_v46 = vunpack.i.l.bf16 %v3875_v38  ;;  %3032 = vmatmul.mubr.msk.f32.vlgmr.msra.gmra.mrb[8].mxu0 %vm5480_vm4, %v1864_v49 }
 0x591   : > { %3224 = vmatpush1.bf16.msra.mxu0 %v4174_v55  ;;  %2549 = vmatprep.mubr.f32.mxu0 %v5472_v43 }
 0x592   : > { %3227 = vmatprep.subr.msk.bf16.mxu0 %vm4184_vm3, %v4189_v2  ;;  %v1846_v14 = vsel %vm748_vm2, %v3876_v46, %v3877_v1  ;;  %v1870_v2 = vld [vmem:[%s5425_s9 + $0x40] sm:$0xff] }
 0x593   : > { %v1840_v33 = vpop.permute.xlu0 %1839  ;;  %v3217_v16 = vpack.c.bf16 %v1846_v14, %v1836_v40  ;;  %v1853_v28 = vpop.permute.xlu1 %1852 }
 0x594   : > { %v1845_v55 = vsel %vm748_vm2, %v1840_v33, %v3876_v46  ;;  %3033 = vmatmul.mubr.msk.f32.gmra.mrb[10].mxu0 %vm5481_vm10, %v1867_v60  ;;  %v1858_v8 = vsel %vm762_vm6, %v1853_v28, %v1855_v42 }
 0x595   : > { %v3219_v31 = vpack.c.bf16 %v1845_v55, %v1835_v32  ;;  %3230 = vmatpush1.bf16.msk.msra.mxu0 %vm4184_vm3, %v4191_v19  ;;  %3218 = vmatprep.subr.bf16.mxu1 %v3217_v16  ;;  %v1742_v19 = vld [vmem:[%s5424_s8] sm:$0xff] }
 0x596   : > { %2555 = vmatprep.mubr.f32.mxu0 %v5472_v43 }
 0x597   : > { %v1857_v5 = vpop.permute.xlu0 %1856  ;;  %3220 = vmatpush1.bf16.msra.mxu1 %v3219_v31 }
 0x598   : > { %3034 = vmatmul.mubr.msk.f32.gmra.mrb[12].mxu0 %vm5482_vm11, %v1870_v2  ;;  %v1859_v13 = vsel %vm762_vm6, %v1855_v42, %v1857_v5 }
 0x599   : > { %2597 = vmatprep.subr.mxu1 %v1859_v13  ;;  %2561 = vmatprep.mubr.f32.mxu0 %v5472_v43 }
 0x59b   : > { %2598 = vmatpush1.msra.mxu1 %v1858_v8 }
 0x59c   : > { %3035 = vmatmul.mubr.msk.f32.gmra.mrb[14].mxu0 %vm5483_vm13, %v1873_v15  ;;  %3036 = vmatmul.mubr.msk.f32.vlgmr.msra.gmra.mrb[8].mxu1 %vm2568_vm12, %v1742_v19 }
 0x59d   : > { %2651 = vmatprep.mubr.f32.mxu1 %v5472_v43  ;;  %2750 = vmatprep.mubr.f32.mxu0 %v5472_v43 }
 0x5a0   : > { %3037 = vmatmul.mubr.msk.f32.gmra.mrb[10].mxu1 %vm2568_vm12, %v1743_v3  ;;  %3042 = vmatmul.mubr.msk.f32.vlgmr.msra.gmra.mrb[16].mxu0 %vm786_vm15, %v2670_v7 }
 0x5a1   : > { %2657 = vmatprep.mubr.f32.mxu1 %v5472_v43  ;;  %2756 = vmatprep.mubr.f32.mxu0 %v5472_v43 }
 0x5a4   : > { %3038 = vmatmul.mubr.msk.f32.gmra.mrb[12].mxu1 %vm2568_vm12, %v1744_v18  ;;  %3043 = vmatmul.mubr.msk.f32.gmra.mrb[18].mxu0 %vm786_vm15, %v2671_v39  ;;  %v2795_v17 = vpop.permute.xlu1 %2794 }
 0x5a5   : > { %2663 = vmatprep.mubr.f32.mxu1 %v5472_v43  ;;  %2762 = vmatprep.mubr.f32.mxu0 %v5472_v43 }
 0x5a8   : > { %3039 = vmatmul.mubr.msk.f32.gmra.mrb[14].mxu1 %vm2568_vm12, %v1745_v56  ;;  %3044 = vmatmul.mubr.msk.f32.gmra.mrb[20].mxu0 %vm786_vm15, %v2672_v36  ;;  %v2790_v9 = vpop.permute.xlu0 %2789  ;;  %v2827_v29 = vpop.permute.xlu1 %2826 }
 0x5a9   : > { %2768 = vmatprep.mubr.f32.mxu0 %v5472_v43  ;;  %2929 = vmatprep.mubr.f32.mxu1 %v5472_v43 }
 0x5ac   : > { %3045 = vmatmul.mubr.msk.f32.gmra.mrb[22].mxu0 %vm786_vm15, %v2673_v51  ;;  %v2822_v21 = vpop.permute.xlu0 %2821  ;;  %v2805_v16 = vpop.permute.xlu1 %2804 }
 0x5b0   : > { %v2800_v10 = vpop.permute.xlu0 %2799 }
 0x5b4   : > { %v2832_v39 = vpop.permute.xlu0 %2831 }
 0x663   : > { %v2545_v45 = vpop.f32.mrb[8].mxu0 }
 0x664   : > { %v2547_v61 = vpop.f32.mrb[9].mxu0 }
 0x667   : > { %v2551_v22 = vpop.f32.mrb[10].mxu0 }
 0x668   : > { %v2553_v26 = vpop.f32.mrb[11].mxu0 }
 0x66b   : > { %v2557_v58 = vpop.f32.mrb[12].mxu0 }
 0x66c   : > { %v2559_v12 = vpop.f32.mrb[13].mxu0 }
 0x66f   : > { %v2563_v34 = vpop.f32.mrb[14].mxu0  ;;  %v2647_v41 = vpop.f32.mrb[8].mxu1 }
 0x670   : > { %v3239_v27 = vadd.f32 %v2647_v41, %v2545_v45  ;;  %v2565_v6 = vpop.f32.mrb[15].mxu0  ;;  %v2649_v20 = vpop.f32.mrb[9].mxu1 }
 0x671   : > { %v3241_v0 = vadd.f32 %v2649_v20, %v2547_v61  ;;  %v2837_v61 = vpop.permute.xlu1 %2836  ;;  %v2855_v20 = vld [vmem:[%s5429_s13] sm:$0x7] }
 0x673   : > { %v2653_v4 = vpop.f32.mrb[10].mxu1  ;;  %v2752_v37 = vpop.f32.mrb[16].mxu0 }
 0x674   : > { %v3243_v43 = vadd.f32 %v2653_v4, %v2551_v22  ;;  %v3240_v47 = vadd.f32 %v3239_v27, %v2752_v37  ;;  %v2655_v62 = vpop.f32.mrb[11].mxu1  ;;  %v2754_v24 = vpop.f32.mrb[17].mxu0 }
 0x675   : > { %v3245_v57 = vadd.f32 %v2655_v62, %v2553_v26  ;;  %v3242_v50 = vadd.f32 %v3241_v0, %v2754_v24  ;;  %v2860_v0 = vpop.permute.xlu0 %2859 }
 0x676   : > { %v2807_v30 = vmul.f32 %v3240_v47, %v2790_v9 }
 0x677   : > { %v2808_v11 = vmul.f32 %v3242_v50, %v2790_v9  ;;  %v2659_v63 = vpop.f32.mrb[12].mxu1  ;;  %v2758_v53 = vpop.f32.mrb[18].mxu0 }
 0x678   : > { %v3247_v59 = vadd.f32 %v2659_v63, %v2557_v58  ;;  %v3244_v52 = vadd.f32 %v3243_v43, %v2758_v53  ;;  %v2661_v44 = vpop.f32.mrb[13].mxu1  ;;  %v2760_v48 = vpop.f32.mrb[19].mxu0  ;;  %v2839_v49 = vadd.f32 %v2822_v21, %v2807_v30 }
 0x679   : > { %v3249_v54 = vadd.f32 %v2661_v44, %v2559_v12  ;;  %v3246_v25 = vadd.f32 %v3245_v57, %v2760_v48  ;;  %v2840_v35 = vadd.f32 %v2822_v21, %v2808_v11 }
 0x67a   : > { %v2809_v23 = vmul.f32 %v3244_v52, %v2795_v17  ;;  %v2847_v2 = vmax.f32 %v2839_v49, 0.0 }
 0x67b   : > { %v2810_v38 = vmul.f32 %v3246_v25, %v2795_v17  ;;  %v2665_v1 = vpop.f32.mrb[14].mxu1  ;;  %v2764_v46 = vpop.f32.mrb[20].mxu0  ;;  %v2848_v13 = vmax.f32 %v2840_v35, 0.0 }
 0x67c   : > { %v2841_v42 = vadd.f32 %v2827_v29, %v2809_v23  ;;  %v3251_v60 = vadd.f32 %v2665_v1, %v2563_v34  ;;  %v3248_v40 = vadd.f32 %v3247_v59, %v2764_v46  ;;  %v2667_v14 = vpop.f32.mrb[15].mxu1  ;;  %v2766_v33 = vpop.f32.mrb[21].mxu0 }
 0x67d   : > { %v2842_v32 = vadd.f32 %v2827_v29, %v2810_v38  ;;  %v3253_v55 = vadd.f32 %v2667_v14, %v2565_v6  ;;  %v3250_v31 = vadd.f32 %v3249_v54, %v2766_v33 }
 0x67e   : > { %v2849_v28 = vmax.f32 %v2841_v42, 0.0  ;;  %v2811_v5 = vmul.f32 %v3248_v40, %v2800_v10 }
 0x67f   : > { %v2850_v15 = vmax.f32 %v2842_v32, 0.0  ;;  %v2812_v19 = vmul.f32 %v3250_v31, %v2800_v10  ;;  %v2770_v8 = vpop.f32.mrb[22].mxu0 }
 0x680   : > { %v3233_v3 = vpack.c.bf16 %v2849_v28, %v2847_v2  ;;  %v3252_v7 = vadd.f32 %v3251_v60, %v2770_v8  ;;  %v2772_v18 = vpop.f32.mrb[23].mxu0  ;;  %v2843_v51 = vadd.f32 %v2832_v39, %v2811_v5 }
 0x681   : > { %v3254_v56 = vadd.f32 %v3253_v55, %v2772_v18  ;;  %v3231_v36 = vpack.c.bf16 %v2850_v15, %v2848_v13  ;;  %v2844_v22 = vadd.f32 %v2832_v39, %v2812_v19 }
 0x682   : > { %v2813_v45 = vmul.f32 %v3252_v7, %v2805_v16  ;;  %v2851_v12 = vmax.f32 %v2843_v51, 0.0 }
 0x683   : > { %v2814_v26 = vmul.f32 %v3254_v56, %v2805_v16  ;;  %3232 = vmatprep.subr.bf16.mxu1 %v3231_v36  ;;  %v2852_v34 = vmax.f32 %v2844_v22, 0.0 }
 0x684   : > { %v2845_v58 = vadd.f32 %v2837_v61, %v2813_v45  ;;  %3234 = vmatpush1.bf16.msra.mxu1 %v3233_v3 }
 0x685   : > { %v2846_v9 = vadd.f32 %v2837_v61, %v2814_v26 }
 0x686   : > { %v2853_v17 = vmax.f32 %v2845_v58, 0.0 }
 0x687   : > { %v2854_v41 = vmax.f32 %v2846_v9, 0.0 }
 0x688   : > { %v3237_v27 = vpack.c.bf16 %v2853_v17, %v2851_v12 }
 0x689   : > { %v3235_v6 = vpack.c.bf16 %v2854_v41, %v2852_v34 }
 0x68b   : > { %3236 = vmatprep.subr.bf16.mxu1 %v3235_v6 }
 0x68c   : > { %3238 = vmatpush1.bf16.msra.mxu1 %v3237_v27 }
 0x68f   : > { %3046 = vmatmul.mubr.msk.f32.vlgmr.msra.gmra.mrb[16].mxu1 %vm5484_vm14, %v2855_v20 }
 0x762   : > { %v2931_v21 = vpop.f32.mrb[16].mxu1 }
 0x763   : > { %v2932_v4 = vadd.f32 %v2931_v21, %v2860_v0  ;;  %v2933_v37 = vpop.f32.mrb[17].mxu1 }
 0x764   : > { %v2934_v43 = vadd.f32 %v2933_v37, %v2860_v0 }
 0x766   : > { %v2938_v47 = vcombine.low %v2932_v4, %v2934_v43 }
 0x768   : > { %2940 = vst [vmem:[%s511_s25] sm:$0x77] %v2938_v47 }
 0x769 PF: > { %s25_s18 = sadd.s32 1, %s3885_s18  }
 0x76a   : > { %p22_p4 = scmp.ge.s32.totalorder %s25_s18, 4  }
 0x76c   :  { %24 = sbr.rel (!%p22_p4) target bundleno = 4 (0x4), region = 113 }

</bundles_post_ra>
